<compile_context>
chip_gen: v6e
topology: v6e:2x2x1
jax: 0.10.0
libtpu: 0.0.40
codegen_flags: <defaults>
</compile_context>

<pallas_src>
import functools

import jax
import jax.numpy as jnp
from jax import lax
from jax.experimental import pallas as pl
from jax.experimental.pallas import tpu as pltpu

SLOPE = 0.2   # opt.slope
EPS = 1e-5    # nn.GroupNorm default eps


# ------------------------- in-kernel helpers (trace-time) -------------------------

def _leaky(x, slope):
    return jnp.maximum(x, slope * x)          # LeakyReLU for slope < 1


def _im2col_tile(xp, rows, W, C):
    """(rows+2, W+2, C) padded tile -> (rows*W, 9*C) patch matrix, tap-major,
    built directly in xp's dtype (the MXU operand dtype)."""
    cols = []
    for ky in range(3):
        for kx in range(3):
            cols.append(xp[ky:ky + rows, kx:kx + W, :].reshape(rows * W, C))
    return jnp.concatenate(cols, axis=-1)
    # TODO(synk): benchmark a shift-and-accumulate variant (pltpu.roll on the W axis
    # + 9 skinny-K dots into an f32 scratch) against this materialized im2col.


def _gn_scale_shift(ch_sum, ch_sq, gamma, beta, groups, n_per_group, eps):
    """Fold GroupNorm (consecutive-channel groups, biased var) into per-channel
    scale/shift.  ch_sum/ch_sq/gamma/beta: (1, C) f32.  Group reductions use static
    lane slices (VPU/XLU) -- no tiny M=1 MXU matmuls between the conv GEMMs."""
    C = gamma.shape[-1]
    cg = C // groups
    inv_n = 1.0 / n_per_group
    scales, shifts = [], []
    for g in range(groups):
        sl = slice(g * cg, (g + 1) * cg)
        m = jnp.sum(ch_sum[:, sl], axis=-1, keepdims=True) * inv_n      # (1, 1)
        e2 = jnp.sum(ch_sq[:, sl], axis=-1, keepdims=True) * inv_n
        # TODO(synk): single-pass E[x^2]-E[x]^2; switch to Welford/centered partials
        # if cancellation becomes an issue at production spatial sizes.
        inv = lax.rsqrt(jnp.maximum(e2 - m * m, 0.0) + eps)
        sc = inv * gamma[:, sl]                                         # (1, cg)
        scales.append(sc)
        shifts.append(beta[:, sl] - m * sc)
    return jnp.concatenate(scales, axis=-1), jnp.concatenate(shifts, axis=-1)


# ------------------------------------ kernel --------------------------------------

def _residual_block_kernel(x_ref, w1_ref, g1_ref, b1_ref,
                           w2c_ref, g2c_ref, b2c_ref,
                           o_ref, y1_s, y2_s, *, th, groups, slope, eps):
    Hp, Wp, Cin = x_ref.shape                      # x is pre-padded: (H+2, W+2, Cin)
    H, W = Hp - 2, Wp - 2
    Cout = o_ref.shape[0]                          # o_ref: (Cout, H*W)
    C2 = 2 * Cout
    T = H // th
    thw = th * W
    cd = x_ref.dtype                               # MXU operand dtype

    w1 = w1_ref[...]
    w2c = w2c_ref[...]

    # ---- phase 1: conv1 per row tile, accumulate GN1 channel stats -----------------
    # y1 (pre-GN) is written into a reflect-padded VMEM scratch so phase 2 can read
    # halo'd rows with plain aligned slices (no concats, no boundary conditionals).
    def conv1_tile(i, carry):
        s, q = carry
        h0 = i * th
        xpt = x_ref[pl.ds(h0, th + 2), :, :]                           # (th+2, W+2, Cin) cd
        p1 = _im2col_tile(xpt, th, W, Cin)                             # (thw, 9*Cin) cd
        y1 = jnp.dot(p1, w1, preferred_element_type=jnp.float32)       # (thw, Cin) f32
        s = s + jnp.sum(y1, axis=0, keepdims=True)                     # GN1 partial sums
        q = q + jnp.sum(y1 * y1, axis=0, keepdims=True)
        y1r = y1.reshape(th, W, Cin)
        r0 = pl.ds(h0 + 1, th)
        y1_s[r0, 1:W + 1, :] = y1r                                     # interior
        y1_s[r0, 0:1, :] = y1r[:, 1:2, :]                              # reflect left col
        y1_s[r0, W + 1:W + 2, :] = y1r[:, W - 2:W - 1, :]              # reflect right col
        return s, q

    z1 = jnp.zeros((1, Cin), jnp.float32)
    s1, q1 = lax.fori_loop(0, T, conv1_tile, (z1, z1))

    # reflect-pad the top/bottom rows (corners come along: columns already padded).
    y1_s[0:1] = y1_s[2:3]
    y1_s[H + 1:H + 2] = y1_s[H - 1:H]

    scale1, shift1 = _gn_scale_shift(s1, q1, g1_ref[...], b1_ref[...],
                                     groups, float(H * W * (Cin // groups)), eps)
    scale1_b = scale1.reshape(1, 1, Cin)
    shift1_b = shift1.reshape(1, 1, Cin)

    # ---- phase 2: fused conv2 || conv_skip per row tile, accumulate GN2 stats ------
    def conv2_tile(i, carry):
        s, q = carry
        h0 = i * th
        yp = y1_s[pl.ds(h0, th + 2), :, :]                             # halo'd rows, f32
        x1p = _leaky(yp * scale1_b + shift1_b, slope).astype(cd)       # GN1 + act + cast
        p2 = _im2col_tile(x1p, th, W, Cin)                             # (thw, 9*Cin) cd
        y2 = jnp.dot(p2, w2c, preferred_element_type=jnp.float32)      # (thw, 2*Cout) f32
        s = s + jnp.sum(y2, axis=0, keepdims=True)                     # GN2 partial sums
        q = q + jnp.sum(y2 * y2, axis=0, keepdims=True)
        r0 = i * thw
        if thw % 8 == 0:
            r0 = pl.multiple_of(r0, 8)
        y2_s[pl.ds(r0, thw), :] = y2                                   # pre-GN, resident
        return s, q

    z2 = jnp.zeros((1, C2), jnp.float32)
    s2, q2 = lax.fori_loop(0, T, conv2_tile, (z2, z2))

    scale2, shift2 = _gn_scale_shift(s2, q2, g2c_ref[...], b2c_ref[...],
                                     2 * groups, float(H * W * (C2 // (2 * groups))), eps)

    # ---- phase 3: GN2 + act + residual add + per-tile transposed (lane-dense) store -
    for t in range(T):
        y2t = y2_s[t * thw:(t + 1) * thw, :]
        a2 = _leaky(y2t * scale2 + shift2, slope)
        res = a2[:, :Cout] + a2[:, Cout:]                              # x2 + x_skip
        o_ref[:, t * thw:(t + 1) * thw] = jnp.transpose(res).astype(o_ref.dtype)


# ----------------------------------- wrapper ---------------------------------------

def _auto_tile_rows(H, W, target_m=1024):
    """Largest divisor of H with tile_rows*W <= target_m (MXU-friendly M)."""
    best = 1
    for th in range(1, H + 1):
        if H % th == 0 and th * W <= max(target_m, W):
            best = th
    return best


def _tile_bytes(shape, itemsize):
    """VMEM footprint of an array including (sublane, lane) tile padding."""
    shape = tuple(int(d) for d in shape)
    if len(shape) < 2:
        shape = (1,) * (2 - len(shape)) + shape
    lane = -(-shape[-1] // 128) * 128
    sub_mult = 8 if itemsize >= 4 else (16 if itemsize == 2 else 32)
    sub = -(-shape[-2] // sub_mult) * sub_mult
    lead = 1
    for d in shape[:-2]:
        lead *= d
    return lead * sub * lane * itemsize


def _vmem_capacity_bytes():
    try:
        cap = getattr(pltpu.get_tpu_info(), "vmem_capacity_bytes", None)
        if cap:
            return int(cap)
    except Exception:
        pass
    return 64 * 2 ** 20       # conservative fallback (v7x per-TensorCore VMEM)


def residual_block_forward(x_nchw, p, compute_dtype=jnp.bfloat16, tile_rows=None):
    """Pallas ResidualBlock.forward.  Input/output are NCHW float32.

    compute_dtype feeds the MXU for the conv GEMMs (bf16 recommended on v5e/v6e/v7x);
    accumulation, GroupNorm statistics and activations are always f32."""
    N, Cin, H, W = x_nchw.shape
    Cout = p["w2c"].shape[-1] // 2
    groups = int(p["groups"])
    cd = jnp.dtype(compute_dtype)

    th = int(tile_rows) if tile_rows is not None else _auto_tile_rows(H, W)
    assert H % th == 0, f"tile_rows={th} must divide H={H}"

    # NCHW -> NHWC and reflect-pad H/W ONCE here, so the kernel never pads x.
    x = jnp.transpose(x_nchw, (0, 2, 3, 1))
    x = jnp.pad(x, ((0, 0), (1, 1), (1, 1), (0, 0)), mode="reflect").astype(cd)

    w1 = p["w1"].astype(cd)
    w2c = p["w2c"].astype(cd)

    kernel = functools.partial(_residual_block_kernel, th=th, groups=groups,
                               slope=SLOPE, eps=EPS)

    # Generation-aware VMEM budget: padded-layout estimate, clamped to 85% of the
    # reported per-core capacity (leaves headroom for compiler scratch).
    ib = cd.itemsize
    thw = th * W
    est = (2 * _tile_bytes((H + 2, W + 2, Cin), ib)            # input block (dbl-buffered)
           + 2 * _tile_bytes((Cout, H * W), 4)                 # output block (dbl-buffered)
           + _tile_bytes((9 * Cin, Cin), ib)                   # weights
           + _tile_bytes((9 * Cin, 2 * Cout), ib)
           + 4 * _tile_bytes((1, max(Cin, 2 * Cout)), 4)
           + _tile_bytes((H + 2, W + 2, Cin), 4)               # y1 scratch (f32, padded)
           + _tile_bytes((H * W, 2 * Cout), 4)                 # y2 scratch (f32)
           + 2 * _tile_bytes((thw, 9 * Cin), ib)               # per-tile patch matrices
           + _tile_bytes((th + 2, W + 2, Cin), 4)              # halo'd y1 tile / x1p
           + _tile_bytes((th + 2, W + 2, Cin), ib)
           + 3 * _tile_bytes((thw, Cin), 4)                    # y1 tile + stats temps
           + 4 * _tile_bytes((thw, 2 * Cout), 4)               # y2 tile + stats + a2
           + _tile_bytes((Cout, thw), 4)                       # transposed store tile
           + (2 << 20))
    cap = _vmem_capacity_bytes()
    vmem_limit = int(min(max(est, 16 * 2 ** 20), int(0.85 * cap)))

    out = pl.pallas_call(
        kernel,
        out_shape=jax.ShapeDtypeStruct((N, Cout, H * W), jnp.float32),
        grid=(N,),
        in_specs=[
            pl.BlockSpec((None, H + 2, W + 2, Cin), lambda b: (b, 0, 0, 0)),
            pl.BlockSpec((9 * Cin, Cin), lambda b: (0, 0)),
            pl.BlockSpec((1, Cin), lambda b: (0, 0)),
            pl.BlockSpec((1, Cin), lambda b: (0, 0)),
            pl.BlockSpec((9 * Cin, 2 * Cout), lambda b: (0, 0)),
            pl.BlockSpec((1, 2 * Cout), lambda b: (0, 0)),
            pl.BlockSpec((1, 2 * Cout), lambda b: (0, 0)),
        ],
        out_specs=pl.BlockSpec((None, Cout, H * W), lambda b: (b, 0, 0)),
        scratch_shapes=[
            pltpu.VMEM((H + 2, W + 2, Cin), jnp.float32),      # y1 (pre-GN), reflect-padded
            pltpu.VMEM((H * W, 2 * Cout), jnp.float32),        # y2 || y_skip (pre-GN)
        ],
        compiler_params=pltpu.CompilerParams(
            # TODO(synk): for N == 1 on v7x, add a "parallel" row-tile grid axis with
            # per-core partial GN stats combined via CMEM so both TensorCores stay busy.
            dimension_semantics=("parallel",),
            vmem_limit_bytes=vmem_limit),
    )(x, w1, p["g1"], p["b1"], w2c, p["g2c"], p["b2c"])
    return out.reshape(N, Cout, H, W)                          # already channel-major


# --------------------------- parameters / reference --------------------------------

def init_params(key, in_channels, out_channels):
    norm_groups = out_channels // 2                            # opt.norm_groups is None
    assert in_channels % norm_groups == 0 and out_channels % norm_groups == 0
    ks = jax.random.split(key, 9)

    def conv_w(k, oc, ic):                                     # PyTorch OIHW layout
        return 0.2 * jax.random.normal(k, (oc, ic, 3, 3), jnp.float32)

    def im2col_w(w):                                           # OIHW -> (9*I, O), tap-major
        return jnp.transpose(w, (2, 3, 1, 0)).reshape(9 * w.shape[1], w.shape[0])

    w1 = conv_w(ks[0], in_channels, in_channels)
    w2 = conv_w(ks[1], out_channels, in_channels)
    wsk = conv_w(ks[2], out_channels, in_channels)
    g1 = 1.0 + 0.1 * jax.random.normal(ks[3], (in_channels,), jnp.float32)
    b1 = 0.1 * jax.random.normal(ks[4], (in_channels,), jnp.float32)
    g2 = 1.0 + 0.1 * jax.random.normal(ks[5], (out_channels,), jnp.float32)
    b2 = 0.1 * jax.random.normal(ks[6], (out_channels,), jnp.float32)
    gs = 1.0 + 0.1 * jax.random.normal(ks[7], (out_channels,), jnp.float32)
    bs = 0.1 * jax.random.normal(ks[8], (out_channels,), jnp.float32)

    return {
        # kernel-side parameters (conv2 / conv_skip fused along Cout)
        "w1": im2col_w(w1),
        "w2c": jnp.concatenate([im2col_w(w2), im2col_w(wsk)], axis=-1),
        "g1": g1.reshape(1, -1), "b1": b1.reshape(1, -1),
        "g2c": jnp.concatenate([g2, gs]).reshape(1, -1),
        "b2c": jnp.concatenate([b2, bs]).reshape(1, -1),
        "groups": norm_groups,
        # reference (PyTorch-layout) parameters
        "w1_oihw": w1, "w2_oihw": w2, "ws_oihw": wsk,
        "g1_v": g1, "b1_v": b1, "g2_v": g2, "b2_v": b2, "gs_v": gs, "bs_v": bs,
    }


def ref_forward(x_nchw, p, conv_dtype=jnp.float32):
    """Plain-JAX reference matching the PyTorch module (NCHW).  conv_dtype controls
    only the conv operand dtype (f32 accumulation), mirroring the kernel's
    bf16-fed-MXU mode so that mode can be validated with a tight tolerance."""
    groups = p["groups"]

    def conv(x, w):
        xp = jnp.pad(x, ((0, 0), (0, 0), (1, 1), (1, 1)), mode="reflect")
        return lax.conv_general_dilated(
            xp.astype(conv_dtype), w.astype(conv_dtype), (1, 1), "VALID",
            dimension_numbers=("NCHW", "OIHW", "NCHW"),
            precision=lax.Precision.HIGHEST,
            preferred_element_type=jnp.float32)

    def gn(x, gamma, beta):
        N, C, H, W = x.shape
        xg = x.reshape(N, groups, C // groups, H, W)
        mean = xg.mean(axis=(2, 3, 4), keepdims=True)
        var = xg.var(axis=(2, 3, 4), keepdims=True)
        xn = ((xg - mean) * lax.rsqrt(var + EPS)).reshape(N, C, H, W)
        return xn * gamma[None, :, None, None] + beta[None, :, None, None]

    def act(x):
        return jnp.where(x > 0, x, SLOPE * x)

    x1 = act(gn(conv(x_nchw, p["w1_oihw"]), p["g1_v"], p["b1_v"]))
    x2 = act(gn(conv(x1, p["w2_oihw"]), p["g2_v"], p["b2_v"]))
    xs = act(gn(conv(x1, p["ws_oihw"]), p["gs_v"], p["bs_v"]))
    return x2 + xs


# -------------------------------------- main ---------------------------------------

if __name__ == "__main__":
    key = jax.random.PRNGKey(0)
    kx, kp = jax.random.split(key)

    N, C_IN, C_OUT, H, W = 2, 4, 4, 16, 16        # NCHW, like the PyTorch module
    x = jax.random.normal(kx, (N, C_IN, H, W), jnp.float32)
    params = init_params(kp, C_IN, C_OUT)

    # f32-fed MXU, 4 row tiles: check against the f32 reference.
    out_f32 = jax.block_until_ready(
        residual_block_forward(x, params, jnp.float32, tile_rows=4))
    assert out_f32.shape == (N, C_OUT, H, W), out_f32.shape
    ref_f32 = jax.block_until_ready(ref_forward(x, params, jnp.float32))
    err_f32 = float(jnp.max(jnp.abs(out_f32 - ref_f32)))
    assert err_f32 < 5e-2, f"f32 mismatch vs reference: max abs err = {err_f32}"

    # bf16-fed MXU (fast path), 2 row tiles: check against a reference that rounds
    # the conv operands to bf16 at the same points.
    out_bf16 = jax.block_until_ready(
        residual_block_forward(x, params, jnp.bfloat16, tile_rows=8))
    ref_bf16 = jax.block_until_ready(ref_forward(x, params, jnp.bfloat16))
    err_bf16 = float(jnp.max(jnp.abs(out_bf16 - ref_bf16)))
    assert err_bf16 < 2e-2, f"bf16 mismatch vs bf16 reference: max abs err = {err_bf16}"

    print("KERNEL_OK")
</pallas_src>

<mosaic_0001>
module attributes {stable_mosaic.version = 11 : i64} {
  func.func @_residual_block_kernel(%arg0: i32, %arg1: memref<1x18x18x4xf32, #tpu.memory_space<vmem>>, %arg2: memref<36x4xf32, #tpu.memory_space<vmem>>, %arg3: memref<1x4xf32, #tpu.memory_space<vmem>>, %arg4: memref<1x4xf32, #tpu.memory_space<vmem>>, %arg5: memref<36x8xf32, #tpu.memory_space<vmem>>, %arg6: memref<1x8xf32, #tpu.memory_space<vmem>>, %arg7: memref<1x8xf32, #tpu.memory_space<vmem>>, %arg8: memref<1x4x256xf32, #tpu.memory_space<vmem>>, %arg9: memref<18x18x4xf32, #tpu.memory_space<vmem>>, %arg10: memref<256x8xf32, #tpu.memory_space<vmem>>) attributes {dimension_semantics = [#tpu.dimension_semantics<parallel>], iteration_bounds = array<i64: 2>, scalar_prefetch = 0 : i64, scratch_operands = 2 : i64, tpu.core_type = #tpu.core_type<tc>, window_params = [{transform_indices = @transform_0, window_bounds = array<i64: 1, 18, 18, 4>}, {pipeline_mode = #tpu.pipeline_mode<synchronous>, transform_indices = @transform_1, window_bounds = array<i64: 36, 4>}, {pipeline_mode = #tpu.pipeline_mode<synchronous>, transform_indices = @transform_2, window_bounds = array<i64: 1, 4>}, {pipeline_mode = #tpu.pipeline_mode<synchronous>, transform_indices = @transform_3, window_bounds = array<i64: 1, 4>}, {pipeline_mode = #tpu.pipeline_mode<synchronous>, transform_indices = @transform_4, window_bounds = array<i64: 36, 8>}, {pipeline_mode = #tpu.pipeline_mode<synchronous>, transform_indices = @transform_5, window_bounds = array<i64: 1, 8>}, {pipeline_mode = #tpu.pipeline_mode<synchronous>, transform_indices = @transform_6, window_bounds = array<i64: 1, 8>}, {transform_indices = @transform_7, window_bounds = array<i64: 1, 4, 256>}]} {
    %c0 = arith.constant 0 : index
    %c0_0 = arith.constant 0 : index
    %0 = vector.load %arg2[%c0, %c0_0] : memref<36x4xf32, #tpu.memory_space<vmem>>, vector<36x4xf32>
    %c0_1 = arith.constant 0 : index
    %c0_2 = arith.constant 0 : index
    %1 = vector.load %arg5[%c0_1, %c0_2] : memref<36x8xf32, #tpu.memory_space<vmem>>, vector<36x8xf32>
    %cst = arith.constant 0.000000e+00 : f32
    %2 = vector.broadcast %cst : f32 to vector<1x4xf32>
    %c0_i32 = arith.constant 0 : i32
    %c4_i32 = arith.constant 4 : i32
    %3 = arith.addi %c0_i32, %c4_i32 : i32
    %c1_i32 = arith.constant 1 : i32
    %4:2 = scf.for %arg11 = %c0_i32 to %3 step %c1_i32 iter_args(%arg12 = %2, %arg13 = %2) -> (vector<1x4xf32>, vector<1x4xf32>)  : i32 {
      %c4_i32_83 = arith.constant 4 : i32
      %226 = arith.muli %arg11, %c4_i32_83 : i32
      %c0_84 = arith.constant 0 : index
      %227 = arith.index_cast %226 : i32 to index
      %c0_85 = arith.constant 0 : index
      %c0_86 = arith.constant 0 : index
      %228 = vector.load %arg1[%c0_84, %227, %c0_85, %c0_86] : memref<1x18x18x4xf32, #tpu.memory_space<vmem>>, vector<1x6x18x4xf32>
      %229 = vector.shape_cast %228 : vector<1x6x18x4xf32> to vector<6x18x4xf32>
      %230 = vector.extract_strided_slice %229 {offsets = [0, 0, 0], sizes = [4, 16, 4], strides = [1, 1, 1]} : vector<6x18x4xf32> to vector<4x16x4xf32>
      %231 = vector.shape_cast %230 : vector<4x16x4xf32> to vector<64x4xf32>
      %232 = vector.extract_strided_slice %229 {offsets = [0, 1, 0], sizes = [4, 16, 4], strides = [1, 1, 1]} : vector<6x18x4xf32> to vector<4x16x4xf32>
      %233 = vector.shape_cast %232 : vector<4x16x4xf32> to vector<64x4xf32>
      %234 = vector.extract_strided_slice %229 {offsets = [0, 2, 0], sizes = [4, 16, 4], strides = [1, 1, 1]} : vector<6x18x4xf32> to vector<4x16x4xf32>
      %235 = vector.shape_cast %234 : vector<4x16x4xf32> to vector<64x4xf32>
      %236 = vector.extract_strided_slice %229 {offsets = [1, 0, 0], sizes = [4, 16, 4], strides = [1, 1, 1]} : vector<6x18x4xf32> to vector<4x16x4xf32>
      %237 = vector.shape_cast %236 : vector<4x16x4xf32> to vector<64x4xf32>
      %238 = vector.extract_strided_slice %229 {offsets = [1, 1, 0], sizes = [4, 16, 4], strides = [1, 1, 1]} : vector<6x18x4xf32> to vector<4x16x4xf32>
      %239 = vector.shape_cast %238 : vector<4x16x4xf32> to vector<64x4xf32>
      %240 = vector.extract_strided_slice %229 {offsets = [1, 2, 0], sizes = [4, 16, 4], strides = [1, 1, 1]} : vector<6x18x4xf32> to vector<4x16x4xf32>
      %241 = vector.shape_cast %240 : vector<4x16x4xf32> to vector<64x4xf32>
      %242 = vector.extract_strided_slice %229 {offsets = [2, 0, 0], sizes = [4, 16, 4], strides = [1, 1, 1]} : vector<6x18x4xf32> to vector<4x16x4xf32>
      %243 = vector.shape_cast %242 : vector<4x16x4xf32> to vector<64x4xf32>
      %244 = vector.extract_strided_slice %229 {offsets = [2, 1, 0], sizes = [4, 16, 4], strides = [1, 1, 1]} : vector<6x18x4xf32> to vector<4x16x4xf32>
      %245 = vector.shape_cast %244 : vector<4x16x4xf32> to vector<64x4xf32>
      %246 = vector.extract_strided_slice %229 {offsets = [2, 2, 0], sizes = [4, 16, 4], strides = [1, 1, 1]} : vector<6x18x4xf32> to vector<4x16x4xf32>
      %247 = vector.shape_cast %246 : vector<4x16x4xf32> to vector<64x4xf32>
      %248 = tpu.concatenate %231, %233, %235, %237, %239, %241, %243, %245, %247 in 1 : vector<64x4xf32>, vector<64x4xf32>, vector<64x4xf32>, vector<64x4xf32>, vector<64x4xf32>, vector<64x4xf32>, vector<64x4xf32>, vector<64x4xf32>, vector<64x4xf32> -> vector<64x36xf32>
      %cst_87 = arith.constant dense<0.000000e+00> : vector<64x4xf32>
      %249 = tpu.matmul %248, %0, %cst_87 {dimension_numbers = #tpu.dot_dimension_numbers<[1], [0], [0], [1], [0, 0, 1, 1], [], []>} : vector<64x36xf32>, vector<36x4xf32>, vector<64x4xf32> -> vector<64x4xf32>
      %cst_88 = arith.constant dense<0.000000e+00> : vector<4xf32>
      %250 = vector.multi_reduction <add>, %249, %cst_88 [0] : vector<64x4xf32> to vector<4xf32>
      %251 = vector.shape_cast %250 : vector<4xf32> to vector<1x4xf32>
      %252 = arith.addf %arg12, %251 : vector<1x4xf32>
      %253 = arith.mulf %249, %249 : vector<64x4xf32>
      %cst_89 = arith.constant dense<0.000000e+00> : vector<4xf32>
      %254 = vector.multi_reduction <add>, %253, %cst_89 [0] : vector<64x4xf32> to vector<4xf32>
      %255 = vector.shape_cast %254 : vector<4xf32> to vector<1x4xf32>
      %256 = arith.addf %arg13, %255 : vector<1x4xf32>
      %257 = vector.shape_cast %249 : vector<64x4xf32> to vector<4x16x4xf32>
      %c1_i32_90 = arith.constant 1 : i32
      %258 = arith.addi %226, %c1_i32_90 : i32
      %259 = arith.index_cast %258 : i32 to index
      %c1 = arith.constant 1 : index
      %c0_91 = arith.constant 0 : index
      %260 = vector.load %arg9[%259, %c1, %c0_91] : memref<18x18x4xf32, #tpu.memory_space<vmem>>, vector<4x16x4xf32>
      tpu.vector_store %arg9[%259, %c1, %c0_91], %257 {strides = array<i32>} : memref<18x18x4xf32, #tpu.memory_space<vmem>>, vector<4x16x4xf32>,
      %261 = vector.extract_strided_slice %257 {offsets = [0, 1, 0], sizes = [4, 1, 4], strides = [1, 1, 1]} : vector<4x16x4xf32> to vector<4x1x4xf32>
      %262 = arith.index_cast %258 : i32 to index
      %c0_92 = arith.constant 0 : index
      %c0_93 = arith.constant 0 : index
      %263 = vector.load %arg9[%262, %c0_92, %c0_93] : memref<18x18x4xf32, #tpu.memory_space<vmem>>, vector<4x1x4xf32>
      tpu.vector_store %arg9[%262, %c0_92, %c0_93], %261 {strides = array<i32>} : memref<18x18x4xf32, #tpu.memory_space<vmem>>, vector<4x1x4xf32>,
      %264 = vector.extract_strided_slice %257 {offsets = [0, 14, 0], sizes = [4, 1, 4], strides = [1, 1, 1]} : vector<4x16x4xf32> to vector<4x1x4xf32>
      %265 = arith.index_cast %258 : i32 to index
      %c17_94 = arith.constant 17 : index
      %c0_95 = arith.constant 0 : index
      %266 = vector.load %arg9[%265, %c17_94, %c0_95] : memref<18x18x4xf32, #tpu.memory_space<vmem>>, vector<4x1x4xf32>
      tpu.vector_store %arg9[%265, %c17_94, %c0_95], %264 {strides = array<i32>} : memref<18x18x4xf32, #tpu.memory_space<vmem>>, vector<4x1x4xf32>,
      scf.yield %252, %256 : vector<1x4xf32>, vector<1x4xf32>
    }
    %c4_i32_3 = arith.constant 4 : i32
    %c2 = arith.constant 2 : index
    %c0_4 = arith.constant 0 : index
    %c0_5 = arith.constant 0 : index
    %5 = vector.load %arg9[%c2, %c0_4, %c0_5] : memref<18x18x4xf32, #tpu.memory_space<vmem>>, vector<1x18x4xf32>
    %c0_6 = arith.constant 0 : index
    %c0_7 = arith.constant 0 : index
    %c0_8 = arith.constant 0 : index
    %6 = vector.load %arg9[%c0_6, %c0_7, %c0_8] : memref<18x18x4xf32, #tpu.memory_space<vmem>>, vector<1x18x4xf32>
    tpu.vector_store %arg9[%c0_6, %c0_7, %c0_8], %5 {strides = array<i32>} : memref<18x18x4xf32, #tpu.memory_space<vmem>>, vector<1x18x4xf32>,
    %c15 = arith.constant 15 : index
    %c0_9 = arith.constant 0 : index
    %c0_10 = arith.constant 0 : index
    %7 = vector.load %arg9[%c15, %c0_9, %c0_10] : memref<18x18x4xf32, #tpu.memory_space<vmem>>, vector<1x18x4xf32>
    %c17 = arith.constant 17 : index
    %c0_11 = arith.constant 0 : index
    %c0_12 = arith.constant 0 : index
    %8 = vector.load %arg9[%c17, %c0_11, %c0_12] : memref<18x18x4xf32, #tpu.memory_space<vmem>>, vector<1x18x4xf32>
    tpu.vector_store %arg9[%c17, %c0_11, %c0_12], %7 {strides = array<i32>} : memref<18x18x4xf32, #tpu.memory_space<vmem>>, vector<1x18x4xf32>,
    %c0_13 = arith.constant 0 : index
    %c0_14 = arith.constant 0 : index
    %9 = vector.load %arg3[%c0_13, %c0_14] : memref<1x4xf32, #tpu.memory_space<vmem>>, vector<1x4xf32>
    %c0_15 = arith.constant 0 : index
    %c0_16 = arith.constant 0 : index
    %10 = vector.load %arg4[%c0_15, %c0_16] : memref<1x4xf32, #tpu.memory_space<vmem>>, vector<1x4xf32>
    %11 = vector.extract_strided_slice %4#0 {offsets = [0, 0], sizes = [1, 2], strides = [1, 1]} : vector<1x4xf32> to vector<1x2xf32>
    %cst_17 = arith.constant dense<0.000000e+00> : vector<1xf32>
    %12 = vector.multi_reduction <add>, %11, %cst_17 [1] : vector<1x2xf32> to vector<1xf32>
    %13 = vector.shape_cast %12 : vector<1xf32> to vector<1x1xf32>
    %cst_18 = arith.constant 0.001953125 : f32
    %14 = vector.broadcast %cst_18 : f32 to vector<1x1xf32>
    %15 = arith.mulf %13, %14 : vector<1x1xf32>
    %16 = vector.extract_strided_slice %4#1 {offsets = [0, 0], sizes = [1, 2], strides = [1, 1]} : vector<1x4xf32> to vector<1x2xf32>
    %cst_19 = arith.constant dense<0.000000e+00> : vector<1xf32>
    %17 = vector.multi_reduction <add>, %16, %cst_19 [1] : vector<1x2xf32> to vector<1xf32>
    %18 = vector.shape_cast %17 : vector<1xf32> to vector<1x1xf32>
    %cst_20 = arith.constant 0.001953125 : f32
    %19 = vector.broadcast %cst_20 : f32 to vector<1x1xf32>
    %20 = arith.mulf %18, %19 : vector<1x1xf32>
    %21 = arith.mulf %15, %15 : vector<1x1xf32>
    %22 = arith.subf %20, %21 : vector<1x1xf32>
    %cst_21 = arith.constant 0.000000e+00 : f32
    %23 = vector.broadcast %cst_21 : f32 to vector<1x1xf32>
    %24 = arith.maximumf %22, %23 : vector<1x1xf32>
    %cst_22 = arith.constant 9.99999974E-6 : f32
    %25 = vector.broadcast %cst_22 : f32 to vector<1x1xf32>
    %26 = arith.addf %24, %25 : vector<1x1xf32>
    %27 = math.rsqrt %26 : vector<1x1xf32>
    %28 = vector.extract_strided_slice %9 {offsets = [0, 0], sizes = [1, 2], strides = [1, 1]} : vector<1x4xf32> to vector<1x2xf32>
    %29 = vector.broadcast %27 : vector<1x1xf32> to vector<1x2xf32>
    %30 = arith.mulf %29, %28 : vector<1x2xf32>
    %31 = vector.extract_strided_slice %10 {offsets = [0, 0], sizes = [1, 2], strides = [1, 1]} : vector<1x4xf32> to vector<1x2xf32>
    %32 = vector.broadcast %15 : vector<1x1xf32> to vector<1x2xf32>
    %33 = arith.mulf %32, %30 : vector<1x2xf32>
    %34 = arith.subf %31, %33 : vector<1x2xf32>
    %35 = vector.extract_strided_slice %4#0 {offsets = [0, 2], sizes = [1, 2], strides = [1, 1]} : vector<1x4xf32> to vector<1x2xf32>
    %cst_23 = arith.constant dense<0.000000e+00> : vector<1xf32>
    %36 = vector.multi_reduction <add>, %35, %cst_23 [1] : vector<1x2xf32> to vector<1xf32>
    %37 = vector.shape_cast %36 : vector<1xf32> to vector<1x1xf32>
    %cst_24 = arith.constant 0.001953125 : f32
    %38 = vector.broadcast %cst_24 : f32 to vector<1x1xf32>
    %39 = arith.mulf %37, %38 : vector<1x1xf32>
    %40 = vector.extract_strided_slice %4#1 {offsets = [0, 2], sizes = [1, 2], strides = [1, 1]} : vector<1x4xf32> to vector<1x2xf32>
    %cst_25 = arith.constant dense<0.000000e+00> : vector<1xf32>
    %41 = vector.multi_reduction <add>, %40, %cst_25 [1] : vector<1x2xf32> to vector<1xf32>
    %42 = vector.shape_cast %41 : vector<1xf32> to vector<1x1xf32>
    %cst_26 = arith.constant 0.001953125 : f32
    %43 = vector.broadcast %cst_26 : f32 to vector<1x1xf32>
    %44 = arith.mulf %42, %43 : vector<1x1xf32>
    %45 = arith.mulf %39, %39 : vector<1x1xf32>
    %46 = arith.subf %44, %45 : vector<1x1xf32>
    %cst_27 = arith.constant 0.000000e+00 : f32
    %47 = vector.broadcast %cst_27 : f32 to vector<1x1xf32>
    %48 = arith.maximumf %46, %47 : vector<1x1xf32>
    %cst_28 = arith.constant 9.99999974E-6 : f32
    %49 = vector.broadcast %cst_28 : f32 to vector<1x1xf32>
    %50 = arith.addf %48, %49 : vector<1x1xf32>
    %51 = math.rsqrt %50 : vector<1x1xf32>
    %52 = vector.extract_strided_slice %9 {offsets = [0, 2], sizes = [1, 2], strides = [1, 1]} : vector<1x4xf32> to vector<1x2xf32>
    %53 = vector.broadcast %51 : vector<1x1xf32> to vector<1x2xf32>
    %54 = arith.mulf %53, %52 : vector<1x2xf32>
    %55 = vector.extract_strided_slice %10 {offsets = [0, 2], sizes = [1, 2], strides = [1, 1]} : vector<1x4xf32> to vector<1x2xf32>
    %56 = vector.broadcast %39 : vector<1x1xf32> to vector<1x2xf32>
    %57 = arith.mulf %56, %54 : vector<1x2xf32>
    %58 = arith.subf %55, %57 : vector<1x2xf32>
    %59 = tpu.concatenate %30, %54 in 1 : vector<1x2xf32>, vector<1x2xf32> -> vector<1x4xf32>
    %60 = tpu.concatenate %34, %58 in 1 : vector<1x2xf32>, vector<1x2xf32> -> vector<1x4xf32>
    %61 = vector.shape_cast %59 : vector<1x4xf32> to vector<1x1x4xf32>
    %62 = vector.shape_cast %60 : vector<1x4xf32> to vector<1x1x4xf32>
    %cst_29 = arith.constant 0.000000e+00 : f32
    %63 = vector.broadcast %cst_29 : f32 to vector<1x8xf32>
    %c0_i32_30 = arith.constant 0 : i32
    %c4_i32_31 = arith.constant 4 : i32
    %64 = arith.addi %c0_i32_30, %c4_i32_31 : i32
    %c1_i32_32 = arith.constant 1 : i32
    %65:2 = scf.for %arg11 = %c0_i32_30 to %64 step %c1_i32_32 iter_args(%arg12 = %63, %arg13 = %63) -> (vector<1x8xf32>, vector<1x8xf32>)  : i32 {
      %c4_i32_83 = arith.constant 4 : i32
      %226 = arith.muli %arg11, %c4_i32_83 : i32
      %227 = arith.index_cast %226 : i32 to index
      %c0_84 = arith.constant 0 : index
      %c0_85 = arith.constant 0 : index
      %228 = vector.load %arg9[%227, %c0_84, %c0_85] : memref<18x18x4xf32, #tpu.memory_space<vmem>>, vector<6x18x4xf32>
      %229 = vector.broadcast %61 : vector<1x1x4xf32> to vector<6x18x4xf32>
      %230 = arith.mulf %228, %229 : vector<6x18x4xf32>
      %231 = vector.broadcast %62 : vector<1x1x4xf32> to vector<6x18x4xf32>
      %232 = arith.addf %230, %231 : vector<6x18x4xf32>
      %cst_86 = arith.constant 2.000000e-01 : f32
      %233 = vector.broadcast %cst_86 : f32 to vector<6x18x4xf32>
      %234 = arith.mulf %233, %232 : vector<6x18x4xf32>
      %235 = arith.maximumf %232, %234 : vector<6x18x4xf32>
      %236 = vector.extract_strided_slice %235 {offsets = [0, 0, 0], sizes = [4, 16, 4], strides = [1, 1, 1]} : vector<6x18x4xf32> to vector<4x16x4xf32>
      %237 = vector.shape_cast %236 : vector<4x16x4xf32> to vector<64x4xf32>
      %238 = vector.extract_strided_slice %235 {offsets = [0, 1, 0], sizes = [4, 16, 4], strides = [1, 1, 1]} : vector<6x18x4xf32> to vector<4x16x4xf32>
      %239 = vector.shape_cast %238 : vector<4x16x4xf32> to vector<64x4xf32>
      %240 = vector.extract_strided_slice %235 {offsets = [0, 2, 0], sizes = [4, 16, 4], strides = [1, 1, 1]} : vector<6x18x4xf32> to vector<4x16x4xf32>
      %241 = vector.shape_cast %240 : vector<4x16x4xf32> to vector<64x4xf32>
      %242 = vector.extract_strided_slice %235 {offsets = [1, 0, 0], sizes = [4, 16, 4], strides = [1, 1, 1]} : vector<6x18x4xf32> to vector<4x16x4xf32>
      %243 = vector.shape_cast %242 : vector<4x16x4xf32> to vector<64x4xf32>
      %244 = vector.extract_strided_slice %235 {offsets = [1, 1, 0], sizes = [4, 16, 4], strides = [1, 1, 1]} : vector<6x18x4xf32> to vector<4x16x4xf32>
      %245 = vector.shape_cast %244 : vector<4x16x4xf32> to vector<64x4xf32>
      %246 = vector.extract_strided_slice %235 {offsets = [1, 2, 0], sizes = [4, 16, 4], strides = [1, 1, 1]} : vector<6x18x4xf32> to vector<4x16x4xf32>
      %247 = vector.shape_cast %246 : vector<4x16x4xf32> to vector<64x4xf32>
      %248 = vector.extract_strided_slice %235 {offsets = [2, 0, 0], sizes = [4, 16, 4], strides = [1, 1, 1]} : vector<6x18x4xf32> to vector<4x16x4xf32>
      %249 = vector.shape_cast %248 : vector<4x16x4xf32> to vector<64x4xf32>
      %250 = vector.extract_strided_slice %235 {offsets = [2, 1, 0], sizes = [4, 16, 4], strides = [1, 1, 1]} : vector<6x18x4xf32> to vector<4x16x4xf32>
      %251 = vector.shape_cast %250 : vector<4x16x4xf32> to vector<64x4xf32>
      %252 = vector.extract_strided_slice %235 {offsets = [2, 2, 0], sizes = [4, 16, 4], strides = [1, 1, 1]} : vector<6x18x4xf32> to vector<4x16x4xf32>
      %253 = vector.shape_cast %252 : vector<4x16x4xf32> to vector<64x4xf32>
      %254 = tpu.concatenate %237, %239, %241, %243, %245, %247, %249, %251, %253 in 1 : vector<64x4xf32>, vector<64x4xf32>, vector<64x4xf32>, vector<64x4xf32>, vector<64x4xf32>, vector<64x4xf32>, vector<64x4xf32>, vector<64x4xf32>, vector<64x4xf32> -> vector<64x36xf32>
      %cst_87 = arith.constant dense<0.000000e+00> : vector<64x8xf32>
      %255 = tpu.matmul %254, %1, %cst_87 {dimension_numbers = #tpu.dot_dimension_numbers<[1], [0], [0], [1], [0, 0, 1, 1], [], []>} : vector<64x36xf32>, vector<36x8xf32>, vector<64x8xf32> -> vector<64x8xf32>
      %cst_88 = arith.constant dense<0.000000e+00> : vector<8xf32>
      %256 = vector.multi_reduction <add>, %255, %cst_88 [0] : vector<64x8xf32> to vector<8xf32>
      %257 = vector.shape_cast %256 : vector<8xf32> to vector<1x8xf32>
      %258 = arith.addf %arg12, %257 : vector<1x8xf32>
      %259 = arith.mulf %255, %255 : vector<64x8xf32>
      %cst_89 = arith.constant dense<0.000000e+00> : vector<8xf32>
      %260 = vector.multi_reduction <add>, %259, %cst_89 [0] : vector<64x8xf32> to vector<8xf32>
      %261 = vector.shape_cast %260 : vector<8xf32> to vector<1x8xf32>
      %262 = arith.addf %arg13, %261 : vector<1x8xf32>
      %c64_i32 = arith.constant 64 : i32
      %263 = arith.muli %arg11, %c64_i32 : i32
      %264 = tpu.assume_multiple %263, 8 : i32
      %265 = arith.index_cast %264 : i32 to index
      %c0_90 = arith.constant 0 : index
      %266 = vector.load %arg10[%265, %c0_90] : memref<256x8xf32, #tpu.memory_space<vmem>>, vector<64x8xf32>
      tpu.vector_store %arg10[%265, %c0_90], %255 {strides = array<i32>} : memref<256x8xf32, #tpu.memory_space<vmem>>, vector<64x8xf32>,
      scf.yield %258, %262 : vector<1x8xf32>, vector<1x8xf32>
    }
    %c4_i32_33 = arith.constant 4 : i32
    %c0_34 = arith.constant 0 : index
    %c0_35 = arith.constant 0 : index
    %66 = vector.load %arg6[%c0_34, %c0_35] : memref<1x8xf32, #tpu.memory_space<vmem>>, vector<1x8xf32>
    %c0_36 = arith.constant 0 : index
    %c0_37 = arith.constant 0 : index
    %67 = vector.load %arg7[%c0_36, %c0_37] : memref<1x8xf32, #tpu.memory_space<vmem>>, vector<1x8xf32>
    %68 = vector.extract_strided_slice %65#0 {offsets = [0, 0], sizes = [1, 2], strides = [1, 1]} : vector<1x8xf32> to vector<1x2xf32>
    %cst_38 = arith.constant dense<0.000000e+00> : vector<1xf32>
    %69 = vector.multi_reduction <add>, %68, %cst_38 [1] : vector<1x2xf32> to vector<1xf32>
    %70 = vector.shape_cast %69 : vector<1xf32> to vector<1x1xf32>
    %cst_39 = arith.constant 0.001953125 : f32
    %71 = vector.broadcast %cst_39 : f32 to vector<1x1xf32>
    %72 = arith.mulf %70, %71 : vector<1x1xf32>
    %73 = vector.extract_strided_slice %65#1 {offsets = [0, 0], sizes = [1, 2], strides = [1, 1]} : vector<1x8xf32> to vector<1x2xf32>
    %cst_40 = arith.constant dense<0.000000e+00> : vector<1xf32>
    %74 = vector.multi_reduction <add>, %73, %cst_40 [1] : vector<1x2xf32> to vector<1xf32>
    %75 = vector.shape_cast %74 : vector<1xf32> to vector<1x1xf32>
    %cst_41 = arith.constant 0.001953125 : f32
    %76 = vector.broadcast %cst_41 : f32 to vector<1x1xf32>
    %77 = arith.mulf %75, %76 : vector<1x1xf32>
    %78 = arith.mulf %72, %72 : vector<1x1xf32>
    %79 = arith.subf %77, %78 : vector<1x1xf32>
    %cst_42 = arith.constant 0.000000e+00 : f32
    %80 = vector.broadcast %cst_42 : f32 to vector<1x1xf32>
    %81 = arith.maximumf %79, %80 : vector<1x1xf32>
    %cst_43 = arith.constant 9.99999974E-6 : f32
    %82 = vector.broadcast %cst_43 : f32 to vector<1x1xf32>
    %83 = arith.addf %81, %82 : vector<1x1xf32>
    %84 = math.rsqrt %83 : vector<1x1xf32>
    %85 = vector.extract_strided_slice %66 {offsets = [0, 0], sizes = [1, 2], strides = [1, 1]} : vector<1x8xf32> to vector<1x2xf32>
    %86 = vector.broadcast %84 : vector<1x1xf32> to vector<1x2xf32>
    %87 = arith.mulf %86, %85 : vector<1x2xf32>
    %88 = vector.extract_strided_slice %67 {offsets = [0, 0], sizes = [1, 2], strides = [1, 1]} : vector<1x8xf32> to vector<1x2xf32>
    %89 = vector.broadcast %72 : vector<1x1xf32> to vector<1x2xf32>
    %90 = arith.mulf %89, %87 : vector<1x2xf32>
    %91 = arith.subf %88, %90 : vector<1x2xf32>
    %92 = vector.extract_strided_slice %65#0 {offsets = [0, 2], sizes = [1, 2], strides = [1, 1]} : vector<1x8xf32> to vector<1x2xf32>
    %cst_44 = arith.constant dense<0.000000e+00> : vector<1xf32>
    %93 = vector.multi_reduction <add>, %92, %cst_44 [1] : vector<1x2xf32> to vector<1xf32>
    %94 = vector.shape_cast %93 : vector<1xf32> to vector<1x1xf32>
    %cst_45 = arith.constant 0.001953125 : f32
    %95 = vector.broadcast %cst_45 : f32 to vector<1x1xf32>
    %96 = arith.mulf %94, %95 : vector<1x1xf32>
    %97 = vector.extract_strided_slice %65#1 {offsets = [0, 2], sizes = [1, 2], strides = [1, 1]} : vector<1x8xf32> to vector<1x2xf32>
    %cst_46 = arith.constant dense<0.000000e+00> : vector<1xf32>
    %98 = vector.multi_reduction <add>, %97, %cst_46 [1] : vector<1x2xf32> to vector<1xf32>
    %99 = vector.shape_cast %98 : vector<1xf32> to vector<1x1xf32>
    %cst_47 = arith.constant 0.001953125 : f32
    %100 = vector.broadcast %cst_47 : f32 to vector<1x1xf32>
    %101 = arith.mulf %99, %100 : vector<1x1xf32>
    %102 = arith.mulf %96, %96 : vector<1x1xf32>
    %103 = arith.subf %101, %102 : vector<1x1xf32>
    %cst_48 = arith.constant 0.000000e+00 : f32
    %104 = vector.broadcast %cst_48 : f32 to vector<1x1xf32>
    %105 = arith.maximumf %103, %104 : vector<1x1xf32>
    %cst_49 = arith.constant 9.99999974E-6 : f32
    %106 = vector.broadcast %cst_49 : f32 to vector<1x1xf32>
    %107 = arith.addf %105, %106 : vector<1x1xf32>
    %108 = math.rsqrt %107 : vector<1x1xf32>
    %109 = vector.extract_strided_slice %66 {offsets = [0, 2], sizes = [1, 2], strides = [1, 1]} : vector<1x8xf32> to vector<1x2xf32>
    %110 = vector.broadcast %108 : vector<1x1xf32> to vector<1x2xf32>
    %111 = arith.mulf %110, %109 : vector<1x2xf32>
    %112 = vector.extract_strided_slice %67 {offsets = [0, 2], sizes = [1, 2], strides = [1, 1]} : vector<1x8xf32> to vector<1x2xf32>
    %113 = vector.broadcast %96 : vector<1x1xf32> to vector<1x2xf32>
    %114 = arith.mulf %113, %111 : vector<1x2xf32>
    %115 = arith.subf %112, %114 : vector<1x2xf32>
    %116 = vector.extract_strided_slice %65#0 {offsets = [0, 4], sizes = [1, 2], strides = [1, 1]} : vector<1x8xf32> to vector<1x2xf32>
    %cst_50 = arith.constant dense<0.000000e+00> : vector<1xf32>
    %117 = vector.multi_reduction <add>, %116, %cst_50 [1] : vector<1x2xf32> to vector<1xf32>
    %118 = vector.shape_cast %117 : vector<1xf32> to vector<1x1xf32>
    %cst_51 = arith.constant 0.001953125 : f32
    %119 = vector.broadcast %cst_51 : f32 to vector<1x1xf32>
    %120 = arith.mulf %118, %119 : vector<1x1xf32>
    %121 = vector.extract_strided_slice %65#1 {offsets = [0, 4], sizes = [1, 2], strides = [1, 1]} : vector<1x8xf32> to vector<1x2xf32>
    %cst_52 = arith.constant dense<0.000000e+00> : vector<1xf32>
    %122 = vector.multi_reduction <add>, %121, %cst_52 [1] : vector<1x2xf32> to vector<1xf32>
    %123 = vector.shape_cast %122 : vector<1xf32> to vector<1x1xf32>
    %cst_53 = arith.constant 0.001953125 : f32
    %124 = vector.broadcast %cst_53 : f32 to vector<1x1xf32>
    %125 = arith.mulf %123, %124 : vector<1x1xf32>
    %126 = arith.mulf %120, %120 : vector<1x1xf32>
    %127 = arith.subf %125, %126 : vector<1x1xf32>
    %cst_54 = arith.constant 0.000000e+00 : f32
    %128 = vector.broadcast %cst_54 : f32 to vector<1x1xf32>
    %129 = arith.maximumf %127, %128 : vector<1x1xf32>
    %cst_55 = arith.constant 9.99999974E-6 : f32
    %130 = vector.broadcast %cst_55 : f32 to vector<1x1xf32>
    %131 = arith.addf %129, %130 : vector<1x1xf32>
    %132 = math.rsqrt %131 : vector<1x1xf32>
    %133 = vector.extract_strided_slice %66 {offsets = [0, 4], sizes = [1, 2], strides = [1, 1]} : vector<1x8xf32> to vector<1x2xf32>
    %134 = vector.broadcast %132 : vector<1x1xf32> to vector<1x2xf32>
    %135 = arith.mulf %134, %133 : vector<1x2xf32>
    %136 = vector.extract_strided_slice %67 {offsets = [0, 4], sizes = [1, 2], strides = [1, 1]} : vector<1x8xf32> to vector<1x2xf32>
    %137 = vector.broadcast %120 : vector<1x1xf32> to vector<1x2xf32>
    %138 = arith.mulf %137, %135 : vector<1x2xf32>
    %139 = arith.subf %136, %138 : vector<1x2xf32>
    %140 = vector.extract_strided_slice %65#0 {offsets = [0, 6], sizes = [1, 2], strides = [1, 1]} : vector<1x8xf32> to vector<1x2xf32>
    %cst_56 = arith.constant dense<0.000000e+00> : vector<1xf32>
    %141 = vector.multi_reduction <add>, %140, %cst_56 [1] : vector<1x2xf32> to vector<1xf32>
    %142 = vector.shape_cast %141 : vector<1xf32> to vector<1x1xf32>
    %cst_57 = arith.constant 0.001953125 : f32
    %143 = vector.broadcast %cst_57 : f32 to vector<1x1xf32>
    %144 = arith.mulf %142, %143 : vector<1x1xf32>
    %145 = vector.extract_strided_slice %65#1 {offsets = [0, 6], sizes = [1, 2], strides = [1, 1]} : vector<1x8xf32> to vector<1x2xf32>
    %cst_58 = arith.constant dense<0.000000e+00> : vector<1xf32>
    %146 = vector.multi_reduction <add>, %145, %cst_58 [1] : vector<1x2xf32> to vector<1xf32>
    %147 = vector.shape_cast %146 : vector<1xf32> to vector<1x1xf32>
    %cst_59 = arith.constant 0.001953125 : f32
    %148 = vector.broadcast %cst_59 : f32 to vector<1x1xf32>
    %149 = arith.mulf %147, %148 : vector<1x1xf32>
    %150 = arith.mulf %144, %144 : vector<1x1xf32>
    %151 = arith.subf %149, %150 : vector<1x1xf32>
    %cst_60 = arith.constant 0.000000e+00 : f32
    %152 = vector.broadcast %cst_60 : f32 to vector<1x1xf32>
    %153 = arith.maximumf %151, %152 : vector<1x1xf32>
    %cst_61 = arith.constant 9.99999974E-6 : f32
    %154 = vector.broadcast %cst_61 : f32 to vector<1x1xf32>
    %155 = arith.addf %153, %154 : vector<1x1xf32>
    %156 = math.rsqrt %155 : vector<1x1xf32>
    %157 = vector.extract_strided_slice %66 {offsets = [0, 6], sizes = [1, 2], strides = [1, 1]} : vector<1x8xf32> to vector<1x2xf32>
    %158 = vector.broadcast %156 : vector<1x1xf32> to vector<1x2xf32>
    %159 = arith.mulf %158, %157 : vector<1x2xf32>
    %160 = vector.extract_strided_slice %67 {offsets = [0, 6], sizes = [1, 2], strides = [1, 1]} : vector<1x8xf32> to vector<1x2xf32>
    %161 = vector.broadcast %144 : vector<1x1xf32> to vector<1x2xf32>
    %162 = arith.mulf %161, %159 : vector<1x2xf32>
    %163 = arith.subf %160, %162 : vector<1x2xf32>
    %164 = tpu.concatenate %87, %111, %135, %159 in 1 : vector<1x2xf32>, vector<1x2xf32>, vector<1x2xf32>, vector<1x2xf32> -> vector<1x8xf32>
    %165 = tpu.concatenate %91, %115, %139, %163 in 1 : vector<1x2xf32>, vector<1x2xf32>, vector<1x2xf32>, vector<1x2xf32> -> vector<1x8xf32>
    %c0_62 = arith.constant 0 : index
    %c0_63 = arith.constant 0 : index
    %166 = vector.load %arg10[%c0_62, %c0_63] : memref<256x8xf32, #tpu.memory_space<vmem>>, vector<64x8xf32>
    %167 = vector.broadcast %164 : vector<1x8xf32> to vector<64x8xf32>
    %168 = arith.mulf %166, %167 : vector<64x8xf32>
    %169 = vector.broadcast %165 : vector<1x8xf32> to vector<64x8xf32>
    %170 = arith.addf %168, %169 : vector<64x8xf32>
    %cst_64 = arith.constant 2.000000e-01 : f32
    %171 = vector.broadcast %cst_64 : f32 to vector<64x8xf32>
    %172 = arith.mulf %171, %170 : vector<64x8xf32>
    %173 = arith.maximumf %170, %172 : vector<64x8xf32>
    %174 = vector.extract_strided_slice %173 {offsets = [0, 0], sizes = [64, 4], strides = [1, 1]} : vector<64x8xf32> to vector<64x4xf32>
    %175 = vector.extract_strided_slice %173 {offsets = [0, 4], sizes = [64, 4], strides = [1, 1]} : vector<64x8xf32> to vector<64x4xf32>
    %176 = arith.addf %174, %175 : vector<64x4xf32>
    %177 = tpu.transpose %176, [1, 0] : vector<64x4xf32> -> vector<4x64xf32>
    %c0_65 = arith.constant 0 : index
    %c0_66 = arith.constant 0 : index
    %c0_67 = arith.constant 0 : index
    %178 = vector.load %arg8[%c0_65, %c0_66, %c0_67] : memref<1x4x256xf32, #tpu.memory_space<vmem>>, vector<1x4x64xf32>
    %179 = vector.shape_cast %178 : vector<1x4x64xf32> to vector<4x64xf32>
    %180 = vector.shape_cast %177 : vector<4x64xf32> to vector<1x4x64xf32>
    tpu.vector_store %arg8[%c0_65, %c0_66, %c0_67], %180 {strides = array<i32>} : memref<1x4x256xf32, #tpu.memory_space<vmem>>, vector<1x4x64xf32>,
    %c64 = arith.constant 64 : index
    %c0_68 = arith.constant 0 : index
    %181 = vector.load %arg10[%c64, %c0_68] : memref<256x8xf32, #tpu.memory_space<vmem>>, vector<64x8xf32>
    %182 = vector.broadcast %164 : vector<1x8xf32> to vector<64x8xf32>
    %183 = arith.mulf %181, %182 : vector<64x8xf32>
    %184 = vector.broadcast %165 : vector<1x8xf32> to vector<64x8xf32>
    %185 = arith.addf %183, %184 : vector<64x8xf32>
    %cst_69 = arith.constant 2.000000e-01 : f32
    %186 = vector.broadcast %cst_69 : f32 to vector<64x8xf32>
    %187 = arith.mulf %186, %185 : vector<64x8xf32>
    %188 = arith.maximumf %185, %187 : vector<64x8xf32>
    %189 = vector.extract_strided_slice %188 {offsets = [0, 0], sizes = [64, 4], strides = [1, 1]} : vector<64x8xf32> to vector<64x4xf32>
    %190 = vector.extract_strided_slice %188 {offsets = [0, 4], sizes = [64, 4], strides = [1, 1]} : vector<64x8xf32> to vector<64x4xf32>
    %191 = arith.addf %189, %190 : vector<64x4xf32>
    %192 = tpu.transpose %191, [1, 0] : vector<64x4xf32> -> vector<4x64xf32>
    %c0_70 = arith.constant 0 : index
    %c0_71 = arith.constant 0 : index
    %c64_72 = arith.constant 64 : index
    %193 = vector.load %arg8[%c0_70, %c0_71, %c64_72] : memref<1x4x256xf32, #tpu.memory_space<vmem>>, vector<1x4x64xf32>
    %194 = vector.shape_cast %193 : vector<1x4x64xf32> to vector<4x64xf32>
    %195 = vector.shape_cast %192 : vector<4x64xf32> to vector<1x4x64xf32>
    tpu.vector_store %arg8[%c0_70, %c0_71, %c64_72], %195 {strides = array<i32>} : memref<1x4x256xf32, #tpu.memory_space<vmem>>, vector<1x4x64xf32>,
    %c128 = arith.constant 128 : index
    %c0_73 = arith.constant 0 : index
    %196 = vector.load %arg10[%c128, %c0_73] : memref<256x8xf32, #tpu.memory_space<vmem>>, vector<64x8xf32>
    %197 = vector.broadcast %164 : vector<1x8xf32> to vector<64x8xf32>
    %198 = arith.mulf %196, %197 : vector<64x8xf32>
    %199 = vector.broadcast %165 : vector<1x8xf32> to vector<64x8xf32>
    %200 = arith.addf %198, %199 : vector<64x8xf32>
    %cst_74 = arith.constant 2.000000e-01 : f32
    %201 = vector.broadcast %cst_74 : f32 to vector<64x8xf32>
    %202 = arith.mulf %201, %200 : vector<64x8xf32>
    %203 = arith.maximumf %200, %202 : vector<64x8xf32>
    %204 = vector.extract_strided_slice %203 {offsets = [0, 0], sizes = [64, 4], strides = [1, 1]} : vector<64x8xf32> to vector<64x4xf32>
    %205 = vector.extract_strided_slice %203 {offsets = [0, 4], sizes = [64, 4], strides = [1, 1]} : vector<64x8xf32> to vector<64x4xf32>
    %206 = arith.addf %204, %205 : vector<64x4xf32>
    %207 = tpu.transpose %206, [1, 0] : vector<64x4xf32> -> vector<4x64xf32>
    %c0_75 = arith.constant 0 : index
    %c0_76 = arith.constant 0 : index
    %c128_77 = arith.constant 128 : index
    %208 = vector.load %arg8[%c0_75, %c0_76, %c128_77] : memref<1x4x256xf32, #tpu.memory_space<vmem>>, vector<1x4x64xf32>
    %209 = vector.shape_cast %208 : vector<1x4x64xf32> to vector<4x64xf32>
    %210 = vector.shape_cast %207 : vector<4x64xf32> to vector<1x4x64xf32>
    tpu.vector_store %arg8[%c0_75, %c0_76, %c128_77], %210 {strides = array<i32>} : memref<1x4x256xf32, #tpu.memory_space<vmem>>, vector<1x4x64xf32>,
    %c192 = arith.constant 192 : index
    %c0_78 = arith.constant 0 : index
    %211 = vector.load %arg10[%c192, %c0_78] : memref<256x8xf32, #tpu.memory_space<vmem>>, vector<64x8xf32>
    %212 = vector.broadcast %164 : vector<1x8xf32> to vector<64x8xf32>
    %213 = arith.mulf %211, %212 : vector<64x8xf32>
    %214 = vector.broadcast %165 : vector<1x8xf32> to vector<64x8xf32>
    %215 = arith.addf %213, %214 : vector<64x8xf32>
    %cst_79 = arith.constant 2.000000e-01 : f32
    %216 = vector.broadcast %cst_79 : f32 to vector<64x8xf32>
    %217 = arith.mulf %216, %215 : vector<64x8xf32>
    %218 = arith.maximumf %215, %217 : vector<64x8xf32>
    %219 = vector.extract_strided_slice %218 {offsets = [0, 0], sizes = [64, 4], strides = [1, 1]} : vector<64x8xf32> to vector<64x4xf32>
    %220 = vector.extract_strided_slice %218 {offsets = [0, 4], sizes = [64, 4], strides = [1, 1]} : vector<64x8xf32> to vector<64x4xf32>
    %221 = arith.addf %219, %220 : vector<64x4xf32>
    %222 = tpu.transpose %221, [1, 0] : vector<64x4xf32> -> vector<4x64xf32>
    %c0_80 = arith.constant 0 : index
    %c0_81 = arith.constant 0 : index
    %c192_82 = arith.constant 192 : index
    %223 = vector.load %arg8[%c0_80, %c0_81, %c192_82] : memref<1x4x256xf32, #tpu.memory_space<vmem>>, vector<1x4x64xf32>
    %224 = vector.shape_cast %223 : vector<1x4x64xf32> to vector<4x64xf32>
    %225 = vector.shape_cast %222 : vector<4x64xf32> to vector<1x4x64xf32>
    tpu.vector_store %arg8[%c0_80, %c0_81, %c192_82], %225 {strides = array<i32>} : memref<1x4x256xf32, #tpu.memory_space<vmem>>, vector<1x4x64xf32>,
    return
  }
  func.func @transform_0(%arg0: i32) -> (i32, i32, i32, i32) {
    %c0_i32 = arith.constant 0 : i32
    %c0_i32_0 = arith.constant 0 : i32
    %c0_i32_1 = arith.constant 0 : i32
    %c0_i32_2 = arith.constant 0 : i32
    return %arg0, %c0_i32, %c0_i32_0, %c0_i32_1 : i32, i32, i32, i32
  }
  func.func @transform_1(%arg0: i32) -> (i32, i32) {
    %c0_i32 = arith.constant 0 : i32
    %c0_i32_0 = arith.constant 0 : i32
    %c0_i32_1 = arith.constant 0 : i32
    return %c0_i32, %c0_i32_0 : i32, i32
  }
  func.func @transform_2(%arg0: i32) -> (i32, i32) {
    %c0_i32 = arith.constant 0 : i32
    %c0_i32_0 = arith.constant 0 : i32
    %c0_i32_1 = arith.constant 0 : i32
    return %c0_i32, %c0_i32_0 : i32, i32
  }
  func.func @transform_3(%arg0: i32) -> (i32, i32) {
    %c0_i32 = arith.constant 0 : i32
    %c0_i32_0 = arith.constant 0 : i32
    %c0_i32_1 = arith.constant 0 : i32
    return %c0_i32, %c0_i32_0 : i32, i32
  }
  func.func @transform_4(%arg0: i32) -> (i32, i32) {
    %c0_i32 = arith.constant 0 : i32
    %c0_i32_0 = arith.constant 0 : i32
    %c0_i32_1 = arith.constant 0 : i32
    return %c0_i32, %c0_i32_0 : i32, i32
  }
  func.func @transform_5(%arg0: i32) -> (i32, i32) {
    %c0_i32 = arith.constant 0 : i32
    %c0_i32_0 = arith.constant 0 : i32
    %c0_i32_1 = arith.constant 0 : i32
    return %c0_i32, %c0_i32_0 : i32, i32
  }
  func.func @transform_6(%arg0: i32) -> (i32, i32) {
    %c0_i32 = arith.constant 0 : i32
    %c0_i32_0 = arith.constant 0 : i32
    %c0_i32_1 = arith.constant 0 : i32
    return %c0_i32, %c0_i32_0 : i32, i32
  }
  func.func @transform_7(%arg0: i32) -> (i32, i32, i32) {
    %c0_i32 = arith.constant 0 : i32
    %c0_i32_0 = arith.constant 0 : i32
    %c0_i32_1 = arith.constant 0 : i32
    return %arg0, %c0_i32, %c0_i32_0 : i32, i32, i32
  }
}

</mosaic_0001>

<bundles_post_ra>
// kernel: tpu_custom_call.1
= control target key start
LH: loop header
LB: loop body
LE: loop exit
PB: predicated region body
PF: predicated region fallthrough
CT: control target
= control target key end

     0   :  { %12 = vsyncpa [#allocation5], 0  ;;  %s4010_s0 = inlined_call_operand.vmem [shape: f32[2,18,18,4], index: 0, kind: input, shape index: {}]   ;;  %s4011_s1 = inlined_call_operand.vmem [shape: f32[36,4], index: 1, kind: input, shape index: {}]   ;;  %s4012_s2 = inlined_call_operand.vmem [shape: f32[1,4], index: 2, kind: input, shape index: {}]   ;;  %s4013_s3 = inlined_call_operand.vmem [shape: f32[1,4], index: 3, kind: input, shape index: {}]   ;;  %s4014_s4 = inlined_call_operand.vmem [shape: f32[36,8], index: 4, kind: input, shape index: {}]   ;;  %s4015_s5 = inlined_call_operand.vmem [shape: f32[1,8], index: 5, kind: input, shape index: {}]   ;;  %s4016_s6 = inlined_call_operand.vmem [shape: f32[1,8], index: 6, kind: input, shape index: {}]   ;;  %s4017_s7 = inlined_call_operand.hbm [shape: f32[2,4,256], index: 7, kind: output, shape index: {}]  }
   0x1   :  { %14 = vsyncpa [#allocation5 + $0x1], 0  ;;  %s2681_s24 = smov 0   ;;  %s2683_s25 = smov 0  }
   0x2   :  { %s2685_s26 = smov 0   ;;  %s2687_s27 = smov 0  }
   0x3 LB: > { %s2702_s28 = sadd.s32 4294967295, %s2594_s27   ;;  %s2246_s29 = sadd.s32 4294967294, %s2594_s27   ;;  %s2594_s27 = sphi %s2687_s27, %s4027_s27   ;;  %s2590_s26 = sphi %s2685_s26, %s4026_s26   ;;  %s2586_s25 = sphi %s2683_s25, %s4025_s25   ;;  %s2582_s24 = sphi %s2681_s24, %s4024_s24  }
   0x4   : > { %s2706_s30 = sadd.s32 1, %s2594_s27   ;;  %s179_s8 = sadd.s32 1, %s2590_s26 }
   0x5   : > { %s176_s9 = ssub.s32 %s2594_s27, %s2706_s30  ;;  %p189_p0 = scmp.ne.s32.totalorder %s2590_s26, %s2586_s25 }
   0x6   : > { %p177_p1 = scmp.eq.s32.totalorder %s176_s9, 0  ;;  %p190_p2 = scmp.eq.s32.totalorder %s2702_s28, 1 }
   0x7   : > { %p195_p3 = scmp.ne.s32.totalorder %s2586_s25, %s2582_s24  ;;  %p196_p4 = scmp.eq.s32.totalorder %s2246_s29, 1 }
   0x8   : > { %s2717_s10 = scalar_select %p177_p1, %s2590_s26, %s179_s8  }
   0x9   : > { %p2719_p5 = por %p190_p2, %p189_p0  ;;  %p2723_p6 = por %p196_p4, %p195_p3 }
   0xa   : > { %p2249_p7 = scmp.ge.s32.totalorder %s2594_s27, 1  ;;  %p240_p8 = scmp.lt.s32.totalorder %s2594_s27, 3 }
   0xc   : > { %p241_p9 = pnand %p2249_p7, %p240_p8 }
   0xd   : > { %s269_s13 = sand.u32 (!%p241_p9), 1, %s2586_s25   ;;  %p272_p10 = scmp.lt.s32.totalorder (!%p241_p9), %s2702_s28, 1 }
   0xe   : > { %244 = sbr.rel (%p241_p9) target bundleno = 1985 (0x7c1), region = 48  ;;  %s2250_s20 = sshll.u32 (!%p241_p9), %s269_s13, 3 }
   0xf   : > { %s2789_s15 = scalar_lea.vmem (!%p241_p9), [#allocation4], %s2250_s20  ;;  %s2795_s16 = smov (!%p241_p9), 0  }
  0x13   : > { %v2734_v0 = vld [vmem:[%s4011_s1] sm:$0xff]  ;;  %v2739_v1 = vld [vmem:[%s4011_s1 + $0x8] sm:$0xff]  ;;  %v2744_v2 = vld [vmem:[%s4011_s1 + $0x10] sm:$0xff]  ;;  %s273_s21 = scalar_select %p272_p10, %s2702_s28, 1  ;;  %v2791_v10 = vmov 0.0   ;;  %v2793_v11 = vmov 0.0  }
  0x14   : > { %v2751_v3 = vld [vmem:[%s4011_s1 + $0x18] sm:$0xff]  ;;  %v2756_v4 = vld [vmem:[%s4011_s1 + $0x20] sm:$0xf]  ;;  %v2766_v6 = vld [vmem:[%s4014_s4 + $0x8] sm:$0xff] }
  0x15   : > { %v2761_v5 = vld [vmem:[%s4014_s4] sm:$0xff]  ;;  %v2771_v7 = vld [vmem:[%s4014_s4 + $0x10] sm:$0xff]  ;;  %v2776_v8 = vld [vmem:[%s4014_s4 + $0x18] sm:$0xff]  ;;  %s2389_s29 = smul.u32 432, %s273_s21 }
  0x16   : > { %v2782_v9 = vld [vmem:[%s4014_s4 + $0x20] sm:$0xf] }
  0x17   : > { %s2787_s14 = scalar_lea.vmem %s4010_s0, %s2389_s29 }
  0x18 LB: >> { %s2253_s20 = smul.u32 96, %s2606_s16  ;;  %vm349_vm0 = vcmask 1045504   ;;  %s2620_s18 = smov 12   ;;  %vm328_vm1 = vcmask 1046528   ;;  %vm685_vm2 = vcmask 1043456   ;;  %vm588_vm3 = vcmask 31744   ;;  %s2606_s16 = sphi %s2795_s16, %s292_s16   ;;  %v2602_v11 = vphi %v2793_v11, %v4021_v11   ;;  %v2598_v10 = vphi %v2791_v10, %v4020_v10  }
  0x19   : >> { %s2621_s19 = smov 8   ;;  %s2622_s21 = smov 4   ;;  %2325 = vmatprep.subr.msk.mxu0 %vm685_vm2, %v2756_v4  ;;  %2369 = vmatprep.subr.msk.mxu1 %vm685_vm2, %v2756_v4  ;;  %vm597_vm4 = vcmask 64512   ;;  %vm606_vm5 = vcmask 97280   ;;  %vm615_vm6 = vcmask 130048   ;;  %vm624_vm7 = vcmask 162816  }
  0x1a   : >> { %s2810_s17 = scalar_lea.vmem %s2787_s14, %s2253_s20  ;;  %s2623_s22 = smov 16   ;;  %2326 = vmatpush3.msk.msra.mxu0 %vm685_vm2, %v2756_v4  ;;  %2374 = vmatpush3.msk.msra.mxu1 %vm685_vm2, %v2756_v4  ;;  %vm633_vm8 = vcmask 195584   ;;  %vm642_vm9 = vcmask 228352   ;;  %vm651_vm10 = vcmask 261120   ;;  %vm660_vm11 = vcmask 293888  }
  0x1b   : >> { %v2813_v12 = vld [vmem:[%s2810_s17 + $0x20] sm:$0xff]  ;;  %v2816_v13 = vld [vmem:[%s2810_s17 + $0x18] sm:$0xff]  ;;  %v2826_v15 = vld [vmem:[%s2810_s17 + $0x8] sm:$0xff]  ;;  %s2624_s23 = smov 20   ;;  %s2625_s29 = smov 24   ;;  %2327 = vmatprep.subr.mxu0 %v2751_v3  ;;  %2370 = vmatprep.subr.mxu1 %v2751_v3  ;;  %vm862_vm12 = vcmask 30726  }
  0x1c   : >> { %v2819_v14 = vld [vmem:[%s2810_s17] sm:$0xff]  ;;  %446 = vrot.lane.b32.xlu1 %v2813_v12, %s2620_s18  ;;  %444 = vrot.lane.b32.xlu0 %v2816_v13, %s2620_s18  ;;  %v300_v18 = vld [vmem:[%s2810_s17 + $0x10] sm:$0x3]  ;;  %v351_v19 = vrot.slane %v2826_v15, 2  ;;  %v330_v20 = vrot.slane %v2826_v15, 1  ;;  %v334_v26 = vrot.slane %v2816_v13, 1 }
  0x1d   : >> { %v350_v16 = vrot.slane %v2819_v14, 2  ;;  %v329_v17 = vrot.slane %v2819_v14, 1  ;;  %v353_v21 = vrot.slane %v300_v18, 2  ;;  %v332_v22 = vrot.slane %v300_v18, 1  ;;  %v2836_v25 = vld [vmem:[%s2810_s17 + $0x28] sm:$0x3]  ;;  %2328 = vmatpush3.msra.mxu0 %v2751_v3  ;;  %2375 = vmatpush3.msra.mxu1 %v2751_v3 }
  0x1e   : >> { %v335_v27 = vrot.slane %v2813_v12, 1  ;;  %v355_v28 = vrot.slane %v2816_v13, 2  ;;  %v356_v29 = vrot.slane %v2813_v12, 2  ;;  %v2847_v32 = vld [vmem:[%s2810_s17 + $0x50] sm:$0xff]  ;;  %v309_v33 = vld [vmem:[%s2810_s17 + $0x58] sm:$0x3]  ;;  %2329 = vmatprep.subr.mxu0 %v2744_v2  ;;  %2371 = vmatprep.subr.mxu1 %v2744_v2 }
  0x1f   : >> { %v352_v23 = vsel %vm349_vm0, %v350_v16, %v351_v19  ;;  %v331_v24 = vsel %vm328_vm1, %v329_v17, %v330_v20  ;;  %v354_v30 = vsel %vm349_vm0, %v351_v19, %v353_v21  ;;  %v333_v31 = vsel %vm328_vm1, %v330_v20, %v332_v22  ;;  %v2852_v35 = vld [vmem:[%s2810_s17 + $0x68] sm:$0xff]  ;;  %v2860_v40 = vld [vmem:[%s2810_s17 + $0x60] sm:$0xff]  ;;  %v312_v41 = vld [vmem:[%s2810_s17 + $0x70] sm:$0x3]  ;;  %2330 = vmatpush3.msra.mxu0 %v2744_v2  ;;  %s2626_s8 = smov 28   ;;  %s2627_s9 = smov 32  }
  0x20   : >> { %420 = vrot.lane.b32.xlu1 %v352_v23, %s2621_s19  ;;  %396 = vrot.lane.b32.xlu0 %v331_v24, %s2622_s21  ;;  %v337_v34 = vrot.slane %v2836_v25, 1  ;;  %v336_v36 = vsel %vm328_vm1, %v334_v26, %v335_v27  ;;  %v357_v37 = vsel %vm349_vm0, %v355_v28, %v356_v29  ;;  %v345_v38 = vrot.slane %v2847_v32, 1  ;;  %v2867_v46 = vld [vmem:[%s2810_s17 + $0x80] sm:$0xff]  ;;  %v2870_v47 = vld [vmem:[%s2810_s17 + $0x78] sm:$0xff]  ;;  %s292_s16 = sadd.s32 1, %s2606_s16  }
  0x21   : >> { %v347_v39 = vrot.slane %v309_v33, 1  ;;  %v366_v42 = vrot.slane %v2847_v32, 2  ;;  %v368_v43 = vrot.slane %v309_v33, 2  ;;  %v373_v44 = vrot.slane %v2860_v40, 1  ;;  %v315_v52 = vld [vmem:[%s2810_s17 + $0x88] sm:$0x3]  ;;  %2376 = vmatpush3.msra.mxu1 %v2744_v2  ;;  %2331 = vmatprep.subr.mxu0 %v2739_v1 }
  0x22   : >> { %v374_v45 = vrot.slane %v2852_v35, 1  ;;  %v338_v48 = vsel %vm328_vm1, %v335_v27, %v337_v34  ;;  %v378_v50 = vrot.slane %v2860_v40, 2  ;;  %v379_v51 = vrot.slane %v2852_v35, 2  ;;  %v2922_v23 = vld [vmem:[%s2810_s17 + $0x30] sm:$0xff]  ;;  %v2926_v26 = vld [vmem:[%s2810_s17 + $0x38] sm:$0xff]  ;;  %2372 = vmatprep.subr.mxu1 %v2739_v1  ;;  %2332 = vmatpush3.msra.mxu0 %v2739_v1  ;;  %p289_p11 = scmp.ge.s32.totalorder %s292_s16, 4  }
  0x23   : >> { %v2876_v49 = vsel %vm328_vm1, %v345_v38, %v347_v39  ;;  %v2884_v53 = vsel %vm349_vm0, %v366_v42, %v368_v43  ;;  %v376_v55 = vrot.slane %v312_v41, 1  ;;  %v381_v56 = vrot.slane %v312_v41, 2  ;;  %2377 = vmatpush3.msra.mxu1 %v2739_v1  ;;  %2333 = vmatprep.subr.mxu0 %v2734_v0  ;;  %v2982_v41 = vld [vmem:[%s2810_s17 + $0x48] sm:$0xff] }
  0x24   : >> { %422 = vrot.lane.b32.xlu1 %v354_v30, %s2621_s19  ;;  %398 = vrot.lane.b32.xlu0 %v333_v31, %s2622_s21  ;;  %v2887_v54 = vsel %vm328_vm1, %v373_v44, %v374_v45  ;;  %v2892_v57 = vsel %vm349_vm0, %v378_v50, %v379_v51  ;;  %v387_v58 = vrot.slane %v2867_v46, 1  ;;  %v392_v59 = vrot.slane %v2867_v46, 2 }
  0x25   : >> { %v386_v60 = vrot.slane %v2870_v47, 1  ;;  %v2898_v61 = vsel %vm328_vm1, %v374_v45, %v376_v55  ;;  %v2901_v62 = vsel %vm349_vm0, %v379_v51, %v381_v56  ;;  %v391_v63 = vrot.slane %v2870_v47, 2  ;;  %2373 = vmatprep.subr.mxu1 %v2734_v0  ;;  %2334 = vmatpush3.msra.mxu0 %v2734_v0 }
  0x26   : >> { %v389_v16 = vrot.slane %v315_v52, 1  ;;  %v394_v18 = vrot.slane %v315_v52, 2  ;;  %v358_v22 = vrot.slane %v2836_v25, 2  ;;  %v339_v25 = vrot.slane %v2922_v23, 1  ;;  %2378 = vmatpush3.msra.mxu1 %v2734_v0 }
  0x27   : >> { %v2905_v17 = vsel %vm328_vm1, %v386_v60, %v387_v58  ;;  %v2911_v20 = vsel %vm349_vm0, %v391_v63, %v392_v59  ;;  %v340_v27 = vrot.slane %v2926_v26, 1  ;;  %v360_v30 = vrot.slane %v2922_v23, 2 }
  0x28   : >> { %400 = vrot.lane.b32.xlu1 %v336_v36, %s2622_s21  ;;  %468 = vrot.lane.b32.xlu0 %v336_v36, %s2623_s22  ;;  %v2908_v19 = vsel %vm328_vm1, %v387_v58, %v389_v16  ;;  %v2916_v21 = vsel %vm349_vm0, %v392_v59, %v394_v18  ;;  %v359_v24 = vsel %vm349_vm0, %v356_v29, %v358_v22  ;;  %v306_v29 = vld [vmem:[%s2810_s17 + $0x40] sm:$0x3]  ;;  %v361_v31 = vrot.slane %v2926_v26, 2  ;;  %s3141_s17 = scalar_lea.vmem [#allocation2], %s2253_s20  ;;  %s2628_s20 = smov (%p289_p11), 126  }
  0x29   : >> { %v341_v28 = vsel %vm328_vm1, %v339_v25, %v340_v27  ;;  %v342_v33 = vrot.slane %v306_v29, 1  ;;  %v344_v43 = vrot.slane %v2982_v41, 1  ;;  %v365_v45 = vrot.slane %v2982_v41, 2 }
  0x2a   : >> { %v362_v34 = vsel %vm349_vm0, %v360_v30, %v361_v31  ;;  %vm857_vm13 = vcmask 25601   ;;  %vm886_vm14 = vcmask (%p289_p11), 15360   ;;  %vm874_vm15 = vcmask (%p289_p11), 25600  }
  0x2b   : >> { %v343_v36 = vsel %vm328_vm1, %v340_v27, %v342_v33  ;;  %v346_v44 = vsel %vm328_vm1, %v344_v43, %v345_v38 }
  0x2c   : >> { %492 = vrot.lane.b32.xlu1 %v357_v37, %s2624_s23  ;;  %470 = vrot.lane.b32.xlu0 %v338_v48, %s2623_s22 }
  0x30   : >> { %424 = vrot.lane.b32.xlu1 %v357_v37, %s2621_s19  ;;  %402 = vrot.lane.b32.xlu0 %v338_v48, %s2622_s21  ;;  %v363_v37 = vrot.slane %v306_v29, 2  ;;  %v367_v48 = vsel %vm349_vm0, %v365_v45, %v366_v42 }
  0x32   : >> { %v364_v39 = vsel %vm349_vm0, %v361_v31, %v363_v37 }
  0x34   : >> { %516 = vrot.lane.b32.xlu1 %v2922_v23, %s2625_s29  ;;  %494 = vrot.lane.b32.xlu0 %v359_v24, %s2624_s23 }
  0x38   : >> { %448 = vrot.lane.b32.xlu1 %v2922_v23, %s2620_s18  ;;  %426 = vrot.lane.b32.xlu0 %v359_v24, %s2621_s19 }
  0x3c   : >> { %540 = vrot.lane.b32.xlu1 %v341_v28, %s2626_s8  ;;  %518 = vrot.lane.b32.xlu0 %v2926_v26, %s2625_s29 }
  0x40   : >> { %472 = vrot.lane.b32.xlu1 %v341_v28, %s2623_s22  ;;  %450 = vrot.lane.b32.xlu0 %v2926_v26, %s2620_s18 }
  0x44   : >> { %564 = vrot.lane.b32.xlu1 %v362_v34, %s2627_s9  ;;  %542 = vrot.lane.b32.xlu0 %v343_v36, %s2626_s8 }
  0x48   : >> { %474 = vrot.lane.b32.xlu1 %v343_v36, %s2623_s22  ;;  %404 = vrot.lane.b32.xlu0 %v341_v28, %s2622_s21 }
  0x4c   : >> { %566 = vrot.lane.b32.xlu1 %v364_v39, %s2627_s9  ;;  %496 = vrot.lane.b32.xlu0 %v362_v34, %s2624_s23 }
  0x50   : >> { %428 = vrot.lane.b32.xlu1 %v362_v34, %s2621_s19  ;;  %406 = vrot.lane.b32.xlu0 %v343_v36, %s2622_s21 }
  0x54   : >> { %520 = vrot.lane.b32.xlu1 %v2982_v41, %s2625_s29  ;;  %498 = vrot.lane.b32.xlu0 %v364_v39, %s2624_s23 }
  0x58   : >> { %452 = vrot.lane.b32.xlu1 %v2982_v41, %s2620_s18  ;;  %430 = vrot.lane.b32.xlu0 %v364_v39, %s2621_s19 }
  0x5c   : >> { %544 = vrot.lane.b32.xlu1 %v346_v44, %s2626_s8  ;;  %522 = vrot.lane.b32.xlu0 %v2847_v32, %s2625_s29 }
  0x60   : >> { %476 = vrot.lane.b32.xlu1 %v346_v44, %s2623_s22  ;;  %454 = vrot.lane.b32.xlu0 %v2847_v32, %s2620_s18 }
  0x64   : >> { %568 = vrot.lane.b32.xlu1 %v367_v48, %s2627_s9  ;;  %546 = vrot.lane.b32.xlu0 %v2876_v49, %s2626_s8 }
  0x68   : >> { %478 = vrot.lane.b32.xlu1 %v2876_v49, %s2623_s22  ;;  %408 = vrot.lane.b32.xlu0 %v346_v44, %s2622_s21 }
  0x6c   : >> { %570 = vrot.lane.b32.xlu1 %v2884_v53, %s2627_s9  ;;  %500 = vrot.lane.b32.xlu0 %v367_v48, %s2624_s23 }
  0x70   : >> { %432 = vrot.lane.b32.xlu1 %v367_v48, %s2621_s19  ;;  %410 = vrot.lane.b32.xlu0 %v2876_v49, %s2622_s21  ;;  %s3226_s21 = smov (%p289_p11), 0  }
  0x74   : >> { %524 = vrot.lane.b32.xlu1 %v2860_v40, %s2625_s29  ;;  %502 = vrot.lane.b32.xlu0 %v2884_v53, %s2624_s23 }
  0x78   : >> { %456 = vrot.lane.b32.xlu1 %v2860_v40, %s2620_s18  ;;  %434 = vrot.lane.b32.xlu0 %v2884_v53, %s2621_s19 }
  0x7c   : >> { %548 = vrot.lane.b32.xlu1 %v2887_v54, %s2626_s8  ;;  %526 = vrot.lane.b32.xlu0 %v2852_v35, %s2625_s29 }
  0x80   : >> { %480 = vrot.lane.b32.xlu1 %v2887_v54, %s2623_s22  ;;  %458 = vrot.lane.b32.xlu0 %v2852_v35, %s2620_s18 }
  0x84   : >> { %572 = vrot.lane.b32.xlu1 %v2892_v57, %s2627_s9  ;;  %550 = vrot.lane.b32.xlu0 %v2898_v61, %s2626_s8 }
  0x88   : >> { %504 = vrot.lane.b32.xlu1 %v2892_v57, %s2624_s23  ;;  %482 = vrot.lane.b32.xlu0 %v2898_v61, %s2623_s22 }
  0x8c   : >> { %506 = vrot.lane.b32.xlu1 %v2901_v62, %s2624_s23  ;;  %574 = vrot.lane.b32.xlu0 %v2901_v62, %s2627_s9 }
  0x8e   : >> { %v447_v38 = vpop.permute.xlu1 %446  ;;  %v445_v35 = vpop.permute.xlu0 %444 }
  0x90   : >> { %530 = vrot.lane.b32.xlu1 %v2867_v46, %s2625_s29  ;;  %528 = vrot.lane.b32.xlu0 %v2870_v47, %s2625_s29 }
  0x92   : >> { %v421_v40 = vpop.permute.xlu1 %420  ;;  %v397_v42 = vpop.permute.xlu0 %396 }
  0x93   : >> { %v589_v59 = vsel %vm588_vm3, %v2819_v14, %v397_v42 }
  0x94   : >> { %554 = vrot.lane.b32.xlu1 %v2908_v19, %s2626_s8  ;;  %552 = vrot.lane.b32.xlu0 %v2905_v17, %s2626_s8  ;;  %v598_v62 = vsel %vm597_vm4, %v589_v59, %v421_v40 }
  0x95   : >> { %v607_v63 = vsel %vm606_vm5, %v598_v62, %v445_v35 }
  0x96   : >> { %v423_v49 = vpop.permute.xlu1 %422  ;;  %v399_v50 = vpop.permute.xlu0 %398 }
  0x97   : >> { %v590_v19 = vsel %vm588_vm3, %v2826_v15, %v399_v50 }
  0x98   : >> { %578 = vrot.lane.b32.xlu1 %v2916_v21, %s2627_s9  ;;  %576 = vrot.lane.b32.xlu0 %v2911_v20, %s2627_s9  ;;  %v599_v25 = vsel %vm597_vm4, %v590_v19, %v423_v49 }
  0x99   : >> { %v608_v28 = vsel %vm606_vm5, %v599_v25, %v447_v38 }
  0x9a   : >> { %v401_v46 = vpop.permute.xlu1 %400  ;;  %v469_v51 = vpop.permute.xlu0 %468 }
  0x9b   : >> { %v616_v18 = vsel %vm615_vm6, %v607_v63, %v469_v51  ;;  %v591_v49 = vsel %vm588_vm3, %v2816_v13, %v401_v46 }
  0x9e   : >> { %v493_v52 = vpop.permute.xlu1 %492  ;;  %v471_v47 = vpop.permute.xlu0 %470 }
  0x9f   : >> { %v625_v14 = vsel %vm624_vm7, %v616_v18, %v493_v52  ;;  %v617_v30 = vsel %vm615_vm6, %v608_v28, %v471_v47 }
  0xa2   : >> { %v425_v53 = vpop.permute.xlu1 %424  ;;  %v3056_v54 = vpop.permute.xlu0 %402 }
  0xa3   : >> { %v600_v50 = vsel %vm597_vm4, %v591_v49, %v425_v53  ;;  %v592_v13 = vsel %vm588_vm3, %v2813_v12, %v3056_v54 }
  0xa6   : >> { %v517_v55 = vpop.permute.xlu1 %516  ;;  %v495_v56 = vpop.permute.xlu0 %494 }
  0xa7   : >> { %v634_v20 = vsel %vm633_vm8, %v625_v14, %v517_v55  ;;  %v626_v31 = vsel %vm624_vm7, %v617_v30, %v495_v56 }
  0xaa   : >> { %v449_v57 = vpop.permute.xlu1 %448  ;;  %v427_v58 = vpop.permute.xlu0 %426 }
  0xab   : >> { %v609_v51 = vsel %vm606_vm5, %v600_v50, %v449_v57  ;;  %v601_v46 = vsel %vm597_vm4, %v592_v13, %v427_v58 }
  0xae   : >> { %v541_v60 = vpop.permute.xlu1 %540  ;;  %v519_v61 = vpop.permute.xlu0 %518 }
  0xaf   : >> { %v643_v21 = vsel %vm642_vm9, %v634_v20, %v541_v60  ;;  %v635_v33 = vsel %vm633_vm8, %v626_v31, %v519_v61 }
  0xb2   : >> { %v473_v16 = vpop.permute.xlu1 %472  ;;  %v451_v17 = vpop.permute.xlu0 %450 }
  0xb3   : >> { %v618_v55 = vsel %vm615_vm6, %v609_v51, %v473_v16  ;;  %v610_v53 = vsel %vm606_vm5, %v601_v46, %v451_v17 }
  0xb6   : >> { %v565_v22 = vpop.permute.xlu1 %564  ;;  %v543_v24 = vpop.permute.xlu0 %542 }
  0xb7   : >> { %v652_v27 = vsel %vm651_vm10, %v643_v21, %v565_v22  ;;  %v644_v34 = vsel %vm642_vm9, %v635_v33, %v543_v24 }
  0xb8   : >> { %2335 = vmatprep.mubr.msk.f32.mxu0 %vm660_vm11, %v652_v27 }
  0xba   : >> { %v475_v29 = vpop.permute.xlu1 %474  ;;  %v405_v15 = vpop.permute.xlu0 %404 }
  0xbb   : >> { %v619_v18 = vsel %vm615_vm6, %v610_v53, %v475_v29  ;;  %v593_v30 = vsel %vm588_vm3, %v2922_v23, %v405_v15 }
  0xbe   : >> { %v567_v36 = vpop.permute.xlu1 %566  ;;  %v497_v37 = vpop.permute.xlu0 %496 }
  0xbf   : >> { %v653_v39 = vsel %vm651_vm10, %v644_v34, %v567_v36  ;;  %v627_v56 = vsel %vm624_vm7, %v618_v55, %v497_v37 }
  0xc0   : >> { %2336 = vmatmul.mubr.msk.f32.vlgmr.msra.gmra.mxu0 %vm660_vm11, %v653_v39 }
  0xc2   : >> { %v429_v43 = vpop.permute.xlu1 %428  ;;  %v407_v44 = vpop.permute.xlu0 %406 }
  0xc3   : >> { %v602_v31 = vsel %vm597_vm4, %v593_v30, %v429_v43  ;;  %v594_v23 = vsel %vm588_vm3, %v2926_v26, %v407_v44 }
  0xc6   : >> { %v521_v45 = vpop.permute.xlu1 %520  ;;  %v499_v48 = vpop.permute.xlu0 %498 }
  0xc7   : >> { %v636_v59 = vsel %vm633_vm8, %v627_v56, %v521_v45  ;;  %v628_v19 = vsel %vm624_vm7, %v619_v18, %v499_v48 }
  0xca   : >> { %v453_v38 = vpop.permute.xlu1 %452  ;;  %v431_v35 = vpop.permute.xlu0 %430 }
  0xcb   : >> { %v611_v33 = vsel %vm606_vm5, %v602_v31, %v453_v38  ;;  %v603_v15 = vsel %vm597_vm4, %v594_v23, %v431_v35 }
  0xce   : >> { %v545_v40 = vpop.permute.xlu1 %544  ;;  %v523_v42 = vpop.permute.xlu0 %522 }
  0xcf   : >> { %v645_v60 = vsel %vm642_vm9, %v636_v59, %v545_v40  ;;  %v637_v14 = vsel %vm633_vm8, %v628_v19, %v523_v42 }
  0xd2   : >> { %v477_v52 = vpop.permute.xlu1 %476  ;;  %v455_v47 = vpop.permute.xlu0 %454 }
  0xd3   : >> { %v620_v37 = vsel %vm615_vm6, %v611_v33, %v477_v52  ;;  %v612_v43 = vsel %vm606_vm5, %v603_v15, %v455_v47 }
  0xd6   : >> { %v569_v61 = vpop.permute.xlu1 %568  ;;  %v547_v62 = vpop.permute.xlu0 %546 }
  0xd7   : >> { %v654_v63 = vsel %vm651_vm10, %v645_v60, %v569_v61  ;;  %v646_v20 = vsel %vm642_vm9, %v637_v14, %v547_v62 }
  0xd8   : >> { %2338 = vmatprep.mubr.msk.f32.mxu0 %vm660_vm11, %v654_v63 }
  0xda   : >> { %v479_v57 = vpop.permute.xlu1 %478  ;;  %v409_v16 = vpop.permute.xlu0 %408 }
  0xdb   : >> { %v621_v51 = vsel %vm615_vm6, %v612_v43, %v479_v57  ;;  %v595_v47 = vsel %vm588_vm3, %v2982_v41, %v409_v16 }
  0xde   : >> { %v571_v21 = vpop.permute.xlu1 %570  ;;  %v501_v22 = vpop.permute.xlu0 %500 }
  0xdf   : >> { %v655_v12 = vsel %vm651_vm10, %v646_v20, %v571_v21  ;;  %v629_v39 = vsel %vm624_vm7, %v620_v37, %v501_v22 }
  0xe0   : >> { %2339 = vmatmul.mubr.msk.f32.gmra.mxu0 %vm660_vm11, %v655_v12 }
  0xe2   : >> { %v433_v54 = vpop.permute.xlu1 %432  ;;  %v411_v58 = vpop.permute.xlu0 %410 }
  0xe3   : >> { %v596_v61 = vsel %vm588_vm3, %v2847_v32, %v411_v58  ;;  %v604_v62 = vsel %vm597_vm4, %v595_v47, %v433_v54 }
  0xe6   : >> { %v525_v24 = vpop.permute.xlu1 %524  ;;  %v503_v17 = vpop.permute.xlu0 %502 }
  0xe7   : >> { %v638_v45 = vsel %vm633_vm8, %v629_v39, %v525_v24  ;;  %v630_v52 = vsel %vm624_vm7, %v621_v51, %v503_v17 }
  0xea   : >> { %v457_v25 = vpop.permute.xlu1 %456  ;;  %v435_v27 = vpop.permute.xlu0 %434 }
  0xeb   : >> { %v605_v63 = vsel %vm597_vm4, %v596_v61, %v435_v27  ;;  %v613_v13 = vsel %vm606_vm5, %v604_v62, %v457_v25 }
  0xee   : >> { %v549_v28 = vpop.permute.xlu1 %548  ;;  %v527_v29 = vpop.permute.xlu0 %526 }
  0xef   : >> { %v647_v48 = vsel %vm642_vm9, %v638_v45, %v549_v28  ;;  %v639_v55 = vsel %vm633_vm8, %v630_v52, %v527_v29 }
  0xf2   : >> { %v481_v34 = vpop.permute.xlu1 %480  ;;  %v459_v36 = vpop.permute.xlu0 %458 }
  0xf3   : >> { %v614_v46 = vsel %vm606_vm5, %v605_v63, %v459_v36  ;;  %v622_v18 = vsel %vm615_vm6, %v613_v13, %v481_v34 }
  0xf6   : >> { %v573_v40 = vpop.permute.xlu1 %572  ;;  %v551_v42 = vpop.permute.xlu0 %550 }
  0xf7   : >> { %v656_v49 = vsel %vm651_vm10, %v647_v48, %v573_v40  ;;  %v648_v56 = vsel %vm642_vm9, %v639_v55, %v551_v42 }
  0xf8   : >> { %2341 = vmatprep.mubr.msk.f32.mxu1 %vm660_vm11, %v656_v49 }
  0xfa   : >> { %v505_v38 = vpop.permute.xlu1 %504  ;;  %v483_v50 = vpop.permute.xlu0 %482 }
  0xfb   : >> { %v623_v19 = vsel %vm615_vm6, %v614_v46, %v483_v50  ;;  %v631_v14 = vsel %vm624_vm7, %v622_v18, %v505_v38 }
  0xfe   : >> { %v507_v59 = vpop.permute.xlu1 %506  ;;  %v575_v60 = vpop.permute.xlu0 %574 }
  0xff   : >> { %v657_v26 = vsel %vm651_vm10, %v648_v56, %v575_v60  ;;  %v632_v41 = vsel %vm624_vm7, %v623_v19, %v507_v59 }
 0x100   : >> { %2342 = vmatmul.mubr.msk.f32.vlgmr.msra.gmra.mxu1 %vm660_vm11, %v657_v26 }
 0x102   : >> { %v531_v44 = vpop.permute.xlu1 %530  ;;  %v529_v35 = vpop.permute.xlu0 %528 }
 0x103   : >> { %v641_v32 = vsel %vm633_vm8, %v632_v41, %v531_v44  ;;  %v640_v16 = vsel %vm633_vm8, %v631_v14, %v529_v35 }
 0x106   : >> { %v555_v53 = vpop.permute.xlu1 %554  ;;  %v553_v57 = vpop.permute.xlu0 %552 }
 0x107   : >> { %v650_v20 = vsel %vm642_vm9, %v641_v32, %v555_v53  ;;  %v649_v21 = vsel %vm642_vm9, %v640_v16, %v553_v57 }
 0x10a   : >> { %v579_v22 = vpop.permute.xlu1 %578  ;;  %v577_v12 = vpop.permute.xlu0 %576 }
 0x10b   : >> { %v659_v54 = vsel %vm651_vm10, %v650_v20, %v579_v22  ;;  %v658_v58 = vsel %vm651_vm10, %v649_v21, %v577_v12 }
 0x10c   : >> { %2344 = vmatprep.mubr.msk.f32.mxu1 %vm660_vm11, %v658_v58 }
 0x10d   : >> { %2345 = vmatmul.mubr.msk.f32.gmra.mxu1 %vm660_vm11, %v659_v54 }
 0x180   : >> { %v2337_v24 = vpop.f32.mrf.mxu0 }
 0x181   : >> { %v817_v17 = vmul.f32 %v2337_v24, %v2337_v24  ;;  %2266 = vst.msk [vmem:[%s3141_s17 + $0x21] sm:$0xff] %vm588_vm3, %v2337_v24  ;;  %v795_v27 = vsel %vm588_vm3, %v2337_v24, 0.0 }
 0x182   : >> { %2277 = vst.msk [vmem:[%s3141_s17 + $0x23] sm:$0x40] %vm862_vm12, %v2337_v24  ;;  %v755_v25 = vpop.f32.mrf.mxu0 }
 0x183   : >> { %v794_v28 = vsel %vm588_vm3, %v755_v25, 0.0  ;;  %v816_v29 = vmul.f32 %v755_v25, %v755_v25  ;;  %2265 = vst.msk [vmem:[%s3141_s17 + $0x19] sm:$0xff] %vm588_vm3, %v755_v25  ;;  %v825_v31 = vsel %vm588_vm3, %v817_v17, 0.0 }
 0x184   : >> { %2273 = vst.msk [vmem:[%s3141_s17 + $0x17] sm:$0x2] %vm857_vm13, %v755_v25  ;;  %v796_v30 = vadd.f32 %v795_v27, %v794_v28 }
 0x185   : >> { %v824_v33 = vsel %vm588_vm3, %v816_v29, 0.0 }
 0x186   : >> { %v826_v34 = vadd.f32 %v825_v31, %v824_v33 }
 0x1a0   : >> { %v2340_v36 = vpop.f32.mrf.mxu0 }
 0x1a1   : >> { %2268 = vst.msk [vmem:[%s3141_s17 + $0x39] sm:$0xff] %vm588_vm3, %v2340_v36  ;;  %v819_v23 = vmul.f32 %v2340_v36, %v2340_v36  ;;  %v799_v38 = vsel %vm588_vm3, %v2340_v36, 0.0 }
 0x1a2   : >> { %2278 = vst.msk [vmem:[%s3141_s17 + $0x3b] sm:$0x40] %vm862_vm12, %v2340_v36  ;;  %v765_v37 = vpop.f32.mrf.mxu0 }
 0x1a3   : >> { %2267 = vst.msk [vmem:[%s3141_s17 + $0x31] sm:$0xff] %vm588_vm3, %v765_v37  ;;  %v818_v39 = vmul.f32 %v765_v37, %v765_v37  ;;  %v797_v48 = vsel %vm588_vm3, %v765_v37, 0.0  ;;  %v829_v52 = vsel %vm588_vm3, %v819_v23, 0.0 }
 0x1a4   : >> { %2274 = vst.msk [vmem:[%s3141_s17 + $0x2f] sm:$0x2] %vm857_vm13, %v765_v37  ;;  %v798_v49 = vadd.f32 %v797_v48, %v796_v30 }
 0x1a5   : >> { %v827_v42 = vsel %vm588_vm3, %v818_v39, 0.0 }
 0x1a6   : >> { %v828_v43 = vadd.f32 %v827_v42, %v826_v34  ;;  %v800_v51 = vadd.f32 %v799_v38, %v798_v49 }
 0x1a8   : >> { %v830_v56 = vadd.f32 %v829_v52, %v828_v43 }
 0x1c0   : >> { %v2343_v45 = vpop.f32.mrf.mxu1 }
 0x1c1   : >> { %2270 = vst.msk [vmem:[%s3141_s17 + $0x51] sm:$0xff] %vm588_vm3, %v2343_v45  ;;  %v821_v60 = vmul.f32 %v2343_v45, %v2343_v45  ;;  %v803_v35 = vsel %vm588_vm3, %v2343_v45, 0.0 }
 0x1c2   : >> { %2279 = vst.msk [vmem:[%s3141_s17 + $0x53] sm:$0x40] %vm862_vm12, %v2343_v45  ;;  %v775_v40 = vpop.f32.mrf.mxu1 }
 0x1c3   : >> { %2269 = vst.msk [vmem:[%s3141_s17 + $0x49] sm:$0xff] %vm588_vm3, %v775_v40  ;;  %v820_v15 = vmul.f32 %v775_v40, %v775_v40  ;;  %v801_v50 = vsel %vm588_vm3, %v775_v40, 0.0  ;;  %v833_v62 = vsel %vm588_vm3, %v821_v60, 0.0 }
 0x1c4   : >> { %2275 = vst.msk [vmem:[%s3141_s17 + $0x47] sm:$0x2] %vm857_vm13, %v775_v40  ;;  %v802_v59 = vadd.f32 %v801_v50, %v800_v51 }
 0x1c5   : >> { %v831_v55 = vsel %vm588_vm3, %v820_v15, 0.0 }
 0x1c6   : >> { %v832_v26 = vadd.f32 %v831_v55, %v830_v56  ;;  %v804_v61 = vadd.f32 %v803_v35, %v802_v59 }
 0x1c8   : >> { %v834_v57 = vadd.f32 %v833_v62, %v832_v26 }
 0x1cd   : >> { %v2346_v44 = vpop.f32.mrf.mxu1 }
 0x1ce   : >> { %2272 = vst.msk [vmem:[%s3141_s17 + $0x69] sm:$0xff] %vm588_vm3, %v2346_v44  ;;  %v823_v63 = vmul.f32 %v2346_v44, %v2346_v44  ;;  %v807_v18 = vsel %vm588_vm3, %v2346_v44, 0.0 }
 0x1cf   : >> { %2280 = vst.msk [vmem:[%s3141_s17 + $0x6b] sm:$0x40] %vm862_vm12, %v2346_v44  ;;  %v785_v47 = vpop.f32.mrf.mxu1  ;;  %v884_v44 = vld [vmem:[%s4012_s2] sm:$0x1] (%p289_p11) }
 0x1d0   : >> { %v805_v13 = vsel %vm588_vm3, %v785_v47, 0.0  ;;  %v822_v46 = vmul.f32 %v785_v47, %v785_v47  ;;  %2271 = vst.msk [vmem:[%s3141_s17 + $0x61] sm:$0xff] %vm588_vm3, %v785_v47  ;;  %v837_v32 = vsel %vm588_vm3, %v823_v63, 0.0  ;;  %v885_v63 = vld [vmem:[%s4013_s3] sm:$0x1] (%p289_p11) }
 0x1d1   : >> { %2276 = vst.msk [vmem:[%s3141_s17 + $0x5f] sm:$0x2] %vm857_vm13, %v785_v47  ;;  %v806_v53 = vadd.f32 %v805_v13, %v804_v61 }
 0x1d2   : >> { %v835_v19 = vsel %vm588_vm3, %v822_v46, 0.0 }
 0x1d3   : >> { %v808_v14 = vadd.f32 %v807_v18, %v806_v53  ;;  %v836_v41 = vadd.f32 %v835_v19, %v834_v57  ;;  %v3222_v19 = vmov (%p289_p11), 0.0  }
 0x1d5   : >> { %v809_v16 = vrot.slane %v808_v14, 4  ;;  %v838_v20 = vadd.f32 %v837_v32, %v836_v41 }
 0x1d7   : >> { %v810_v21 = vadd.f32 %v809_v16, %v808_v14  ;;  %v839_v22 = vrot.slane %v838_v20, 4  ;;  %v3224_v14 = vmov (%p289_p11), 0.0  }
 0x1d8   : > { %v868_v0 = vld [vmem:[#allocation2 + $0x30] sm:$0xff] (%p289_p11)  ;;  %v869_v1 = vld [vmem:[#allocation2 + $0x38] sm:$0xff] (%p289_p11)  ;;  %v870_v2 = vld [vmem:[#allocation2 + $0x40] sm:$0x3] (%p289_p11) }
 0x1d9   : >> { %v811_v12 = vrot.slane %v810_v21, 2  ;;  %v840_v54 = vadd.f32 %v839_v22, %v838_v20  ;;  %872 = vst.msk [vmem:[#allocation2] sm:$0xff] (%p289_p11), %vm588_vm3, %v868_v0  ;;  %873 = vst.msk [vmem:[#allocation2 + $0x8] sm:$0xff] (%p289_p11), %vm588_vm3, %v869_v1  ;;  %v877_v3 = vld [vmem:[#allocation2 + $0x168] sm:$0xff] (%p289_p11)  ;;  %v878_v4 = vld [vmem:[#allocation2 + $0x170] sm:$0xff] (%p289_p11) }
 0x1da   : > { %875 = vst.msk [vmem:[#allocation2 + $0x10] sm:$0x3] (%p289_p11), %vm874_vm15, %v870_v2 }
 0x1db   : >> { %v812_v58 = vadd.f32 %v811_v12, %v810_v21  ;;  %v841_v24 = vrot.slane %v840_v54, 2  ;;  %881 = vst.msk [vmem:[#allocation2 + $0x198] sm:$0xff] (%p289_p11), %vm588_vm3, %v877_v3  ;;  %882 = vst.msk [vmem:[#allocation2 + $0x1a0] sm:$0xff] (%p289_p11), %vm588_vm3, %v878_v4 }
 0x1dd   : >> { %v813_v17 = vrot.slane %v812_v58, 1  ;;  %v842_v25 = vadd.f32 %v841_v24, %v840_v54 }
 0x1df   : >> { %v814_v27 = vadd.f32 %v813_v17, %v812_v58  ;;  %v843_v28 = vrot.slane %v842_v25, 1 }
 0x1e1   : >> { %v815_v29 = vadd.f32 %v2602_v11, %v814_v27   ;;  %v844_v30 = vadd.f32 %v843_v28, %v842_v25  ;;  %291 = sbr.rel (!%p289_p11) target bundleno = 24 (0x18), region = 104 }
 0x1e3   : >> { %v845_v31 = vadd.f32 %v2598_v10, %v844_v30   ;;  %v4021_v11 = vmov %v815_v29  ;;  %904 = vrot.lane.b32.xlu0 (%p289_p11), %v815_v29, %s2628_s20  ;;  %v887_v33 = vsel (%p289_p11), %vm886_vm14, %v815_v29, 0.0 }
 0x1e4   : > { %888 = vadd.xlane.f32.xlu1 (%p289_p11), %v887_v33 }
 0x1e5   : >> { %v4020_v10 = vmov %v845_v31  ;;  %v891_v11 = vsel (%p289_p11), %vm886_vm14, %v845_v31, 0.0 }
 0x1e6   : > { %v879_v10 = vld [vmem:[#allocation2 + $0x178] sm:$0x3] }
 0x1e7   : > { %912 = vrot.lane.b32.xlu0 %v845_v31, %s2628_s20  ;;  %883 = vst.msk [vmem:[#allocation2 + $0x1a8] sm:$0x3] %vm874_vm15, %v879_v10 }
 0x206   : > { %892 = vadd.xlane.f32.xlu0 %v891_v11 }
 0x255   : > { %v905_v34 = vpop.permute.xlu0 %904 }
 0x256   : > { %v907_v36 = vsel %vm886_vm14, %v905_v34, 0.0 }
 0x257   : > { %908 = vadd.xlane.f32.xlu1 %v907_v36 }
 0x259   : > { %v913_v37 = vpop.permute.xlu0 %912 }
 0x25a   : > { %v915_v39 = vsel %vm886_vm14, %v913_v37, 0.0 }
 0x25b   : > { %916 = vadd.xlane.f32.xlu1 %v915_v39 }
 0x26d   : > { %v889_v45 = vpop.xlane.xlu1 %888 }
 0x26e   : > { %v890_v48 = vmul.f32 0.001953125, %v889_v45 }
 0x270   : > { %v895_v42 = vmul.f32 %v890_v48, %v890_v48 }
 0x28f   : > { %v893_v40 = vpop.xlane.xlu0 %892 }
 0x290   : > { %v894_v49 = vmul.f32 0.001953125, %v893_v40 }
 0x292   : > { %v896_v23 = vsub.f32 %v894_v49, %v895_v42 }
 0x294   : > { %v897_v15 = vmax.f32 %v896_v23, 0.0 }
 0x296   : > { %v898_v50 = vadd.f32 1e-05, %v897_v15 }
 0x298   : > { %2498 = vrsqrt.f32 %v898_v50 }
 0x2a5   : > { %v2499_v26 = vpop.eup %2498 }
 0x2a6   : > { %v900_v35 = vmul.f32 %v2499_v26, %v884_v44 }
 0x2a8   : > { %v901_v61 = vmul.f32 %v900_v35, %v890_v48 }
 0x2aa   : > { %v902_v53 = vsub.f32 %v885_v63, %v901_v61 }
 0x2e0   : > { %v909_v43 = vpop.xlane.xlu1 %908 }
 0x2e1   : > { %v910_v38 = vmul.f32 0.001953125, %v909_v43 }
 0x2e3   : > { %v919_v52 = vmul.f32 %v910_v38, %v910_v38 }
 0x2e4   : > { %v917_v51 = vpop.xlane.xlu1 %916 }
 0x2e5   : > { %v918_v55 = vmul.f32 0.001953125, %v917_v51 }
 0x2e7   : > { %v920_v56 = vsub.f32 %v918_v55, %v919_v52 }
 0x2e9   : > { %v921_v59 = vmax.f32 %v920_v56, 0.0 }
 0x2eb   : > { %v922_v60 = vadd.f32 1e-05, %v921_v59 }
 0x2ed   : > { %2500 = vrsqrt.f32 %v922_v60 }
 0x2fa   : > { %v2501_v47 = vpop.eup %2500 }
 0x2fb   : > { %v924_v62 = vmul.f32 %v2501_v47, %v884_v44 }
 0x2fd   : > { %v925_v13 = vmul.f32 %v924_v62, %v910_v38  ;;  %v3217_v46 = vsel %vm886_vm14, %v900_v35, %v924_v62 }
 0x2ff   : > { %v926_v57 = vsub.f32 %v885_v63, %v925_v13 }
 0x301   : > { %v3220_v18 = vsel %vm886_vm14, %v902_v53, %v926_v57 }
 0x302 LB: >> { %v958_v41 = vlaneseq  ;;  %2347 = vmatprep.subr.msk.mxu0 %vm685_vm2, %v2782_v9  ;;  %2379 = vmatprep.subr.msk.mxu1 %vm685_vm2, %v2782_v9  ;;  %s2282_s22 = smul.u32 96, %s2618_s21  ;;  %s2629_s29 = smov 12   ;;  %s2618_s21 = sphi %s3226_s21, %s934_s21   ;;  %v2614_v14 = vphi %v3224_v14, %v4023_v14   ;;  %v2610_v19 = vphi %v3222_v19, %v4022_v19  }
 0x303   : >> { %2348 = vmatpush3.msk.msra.mxu0 %vm685_vm2, %v2782_v9  ;;  %2384 = vmatpush3.msk.msra.mxu1 %vm685_vm2, %v2782_v9  ;;  %s2630_s8 = smov 8   ;;  %s2631_s9 = smov 4  }
 0x304   : >> { %v959_v32 = vshrl.u32 %v958_v41, 7  ;;  %2349 = vmatprep.subr.mxu0 %v2776_v8  ;;  %2380 = vmatprep.subr.mxu1 %v2776_v8  ;;  %s3254_s23 = scalar_lea.vmem [#allocation2], %s2282_s22  ;;  %s2632_s17 = smov 16  }
 0x305   : >> { %2350 = vmatpush3.msra.mxu0 %v2776_v8  ;;  %2385 = vmatpush3.msra.mxu1 %v2776_v8  ;;  %v944_v20 = vld [vmem:[%s3254_s23 + $0x20] sm:$0xff]  ;;  %v943_v21 = vld [vmem:[%s3254_s23 + $0x18] sm:$0xff]  ;;  %v941_v58 = vld [vmem:[%s3254_s23 + $0x8] sm:$0xff]  ;;  %s2633_s14 = smov 20   ;;  %s2634_s16 = smov 24  }
 0x306   : >> { %v3250_v16 = vsub.s32 0, %v959_v32  ;;  %2351 = vmatprep.subr.mxu0 %v2771_v7  ;;  %2381 = vmatprep.subr.mxu1 %v2771_v7  ;;  %v940_v22 = vld [vmem:[%s3254_s23] sm:$0xff]  ;;  %v942_v24 = vld [vmem:[%s3254_s23 + $0x10] sm:$0x3]  ;;  %v945_v17 = vld [vmem:[%s3254_s23 + $0x28] sm:$0x3] }
 0x307   : >> { %2352 = vmatpush3.msra.mxu0 %v2771_v7  ;;  %2386 = vmatpush3.msra.mxu1 %v2771_v7  ;;  %v946_v52 = vld [vmem:[%s3254_s23 + $0x30] sm:$0xff]  ;;  %v947_v59 = vld [vmem:[%s3254_s23 + $0x38] sm:$0xff]  ;;  %v952_v63 = vld [vmem:[%s3254_s23 + $0x60] sm:$0xff]  ;;  %s2635_s18 = smov 28   ;;  %s2636_s19 = smov 32  }
 0x308   : >> { %v3263_v12 = vrot.slane %v3217_v46, %v3250_v16  ;;  %v3267_v54 = vrot.slane %v3220_v18, %v3250_v16  ;;  %2353 = vmatprep.subr.mxu0 %v2766_v6  ;;  %2382 = vmatprep.subr.mxu1 %v2766_v6  ;;  %v951_v60 = vld [vmem:[%s3254_s23 + $0x58] sm:$0x3]  ;;  %v953_v57 = vld [vmem:[%s3254_s23 + $0x68] sm:$0xff]  ;;  %s2292_s22 = sshll.u32 %s2618_s21, 6  ;;  %s934_s21 = sadd.s32 1, %s2618_s21  }
 0x309   : >> { %2354 = vmatpush3.msra.mxu0 %v2766_v6  ;;  %2387 = vmatpush3.msra.mxu1 %v2766_v6  ;;  %p931_p12 = scmp.ge.s32.totalorder %s934_s21, 4  }
 0x30a   : >> { %v966_v25 = vmul.f32 %v3263_v12, %v944_v20  ;;  %v965_v27 = vmul.f32 %v3263_v12, %v943_v21  ;;  %v962_v28 = vmul.f32 %v3263_v12, %v940_v22  ;;  %v963_v29 = vmul.f32 %v3263_v12, %v941_v58  ;;  %2355 = vmatprep.subr.mxu0 %v2761_v5 }
 0x30b   : >> { %v964_v30 = vmul.f32 %v3263_v12, %v942_v24  ;;  %v967_v31 = vmul.f32 %v3263_v12, %v945_v17  ;;  %2356 = vmatpush3.msra.mxu0 %v2761_v5  ;;  %2383 = vmatprep.subr.mxu1 %v2761_v5  ;;  %v968_v44 = vmul.f32 %v3263_v12, %v946_v52  ;;  %vm1908_vm2 = vcmask (%p931_p12), 1043968  }
 0x30c   : >> { %v988_v33 = vadd.f32 %v3267_v54, %v966_v25  ;;  %v987_v11 = vadd.f32 %v3267_v54, %v965_v27  ;;  %v984_v34 = vadd.f32 %v3267_v54, %v962_v28  ;;  %v985_v36 = vadd.f32 %v3267_v54, %v963_v29  ;;  %2388 = vmatpush3.msra.mxu1 %v2761_v5  ;;  %v954_v28 = vld [vmem:[%s3254_s23 + $0x70] sm:$0x3]  ;;  %v956_v29 = vld [vmem:[%s3254_s23 + $0x80] sm:$0xff] }
 0x30d   : >> { %v986_v37 = vadd.f32 %v3267_v54, %v964_v30  ;;  %v989_v2 = vadd.f32 %v3267_v54, %v967_v31  ;;  %v969_v13 = vmul.f32 %v3263_v12, %v947_v59  ;;  %v973_v53 = vmul.f32 %v3263_v12, %v951_v60  ;;  %v948_v30 = vld [vmem:[%s3254_s23 + $0x40] sm:$0x3] }
 0x30e   : >> { %v1006_v39 = vmul.f32 0.2, %v988_v33  ;;  %v1005_v0 = vmul.f32 0.2, %v987_v11  ;;  %v1002_v1 = vmul.f32 0.2, %v984_v34  ;;  %v990_v41 = vadd.f32 %v3267_v54, %v968_v44 }
 0x30f   : >> { %v1003_v3 = vmul.f32 0.2, %v985_v36  ;;  %v1004_v4 = vmul.f32 0.2, %v986_v37  ;;  %v1007_v15 = vmul.f32 0.2, %v989_v2  ;;  %v3330_v32 = vadd.f32 %v3267_v54, %v973_v53 }
 0x310   : >> { %v3292_v10 = vmax.f32 %v988_v33, %v1006_v39  ;;  %v3294_v45 = vmax.f32 %v987_v11, %v1005_v0  ;;  %v3296_v48 = vmax.f32 %v984_v34, %v1002_v1  ;;  %v974_v20 = vmul.f32 %v3263_v12, %v952_v63 }
 0x311   : >> { %v3298_v40 = vmax.f32 %v985_v36, %v1003_v3  ;;  %v1022_v42 = vmax.f32 %v986_v37, %v1004_v4  ;;  %v3315_v26 = vmax.f32 %v989_v2, %v1007_v15  ;;  %v991_v17 = vadd.f32 %v3267_v54, %v969_v13 }
 0x312   : >> { %1168 = vrot.lane.b32.xlu1 %v3292_v10, %s2629_s29  ;;  %1166 = vrot.lane.b32.xlu0 %v3294_v45, %s2629_s29  ;;  %v1072_v49 = vrot.slane %v3296_v48, 2  ;;  %v1051_v23 = vrot.slane %v3296_v48, 1  ;;  %v1056_v61 = vrot.slane %v3294_v45, 1  ;;  %v1057_v62 = vrot.slane %v3292_v10, 1 }
 0x313   : >> { %v1073_v43 = vrot.slane %v3298_v40, 2  ;;  %v1052_v38 = vrot.slane %v3298_v40, 1  ;;  %v1075_v50 = vrot.slane %v1022_v42, 2  ;;  %v1054_v51 = vrot.slane %v1022_v42, 1 }
 0x314   : >> { %v1058_v21 = vsel %vm328_vm1, %v1056_v61, %v1057_v62  ;;  %v1077_v22 = vrot.slane %v3294_v45, 2  ;;  %v1078_v58 = vrot.slane %v3292_v10, 2  ;;  %v1059_v24 = vrot.slane %v3315_v26, 1 }
 0x315   : >> { %v1074_v55 = vsel %vm349_vm0, %v1072_v49, %v1073_v43  ;;  %v1053_v56 = vsel %vm328_vm1, %v1051_v23, %v1052_v38  ;;  %v1076_v35 = vsel %vm349_vm0, %v1073_v43, %v1075_v50  ;;  %v1055_v47 = vsel %vm328_vm1, %v1052_v38, %v1054_v51  ;;  %v955_v49 = vld [vmem:[%s3254_s23 + $0x78] sm:$0xff]  ;;  %v957_v23 = vld [vmem:[%s3254_s23 + $0x88] sm:$0x3] }
 0x316   : >> { %1142 = vrot.lane.b32.xlu1 %v1074_v55, %s2630_s8  ;;  %1118 = vrot.lane.b32.xlu0 %v1053_v56, %s2631_s9  ;;  %v996_v25 = vadd.f32 %v3267_v54, %v974_v20  ;;  %v975_v27 = vmul.f32 %v3263_v12, %v953_v57  ;;  %v1008_v31 = vmul.f32 0.2, %v990_v41  ;;  %v1079_v34 = vsel %vm349_vm0, %v1077_v22, %v1078_v58 }
 0x317   : >> { %v1060_v36 = vsel %vm328_vm1, %v1057_v62, %v1059_v24  ;;  %v976_v37 = vmul.f32 %v3263_v12, %v954_v28  ;;  %v978_v39 = vmul.f32 %v3263_v12, %v956_v29  ;;  %v1009_v0 = vmul.f32 0.2, %v991_v17 }
 0x318   : >> { %v1014_v33 = vmul.f32 0.2, %v996_v25  ;;  %v997_v11 = vadd.f32 %v3267_v54, %v975_v27  ;;  %v970_v1 = vmul.f32 %v3263_v12, %v948_v30  ;;  %v3359_v15 = vmax.f32 %v990_v41, %v1008_v31 }
 0x319   : >> { %v998_v4 = vadd.f32 %v3267_v54, %v976_v37  ;;  %v1000_v42 = vadd.f32 %v3267_v54, %v978_v39  ;;  %v1080_v43 = vrot.slane %v3315_v26, 2  ;;  %v977_v56 = vmul.f32 %v3263_v12, %v955_v49 }
 0x31a   : >> { %1144 = vrot.lane.b32.xlu1 %v1076_v35, %s2630_s8  ;;  %1120 = vrot.lane.b32.xlu0 %v1055_v47, %s2631_s9  ;;  %v3351_v2 = vmax.f32 %v996_v25, %v1014_v33  ;;  %v1015_v3 = vmul.f32 0.2, %v997_v11  ;;  %v979_v59 = vmul.f32 %v3263_v12, %v957_v23  ;;  %v3368_v60 = vmax.f32 %v991_v17, %v1009_v0 }
 0x31b   : >> { %v1016_v52 = vmul.f32 0.2, %v998_v4  ;;  %v1018_v55 = vmul.f32 0.2, %v1000_v42  ;;  %v992_v44 = vadd.f32 %v3267_v54, %v970_v1  ;;  %v999_v62 = vadd.f32 %v3267_v54, %v977_v56 }
 0x31c   : >> { %v3362_v38 = vmax.f32 %v997_v11, %v1015_v3  ;;  %v1095_v50 = vrot.slane %v3351_v2, 1  ;;  %v1100_v51 = vrot.slane %v3351_v2, 2  ;;  %v1081_v63 = vsel %vm349_vm0, %v1078_v58, %v1080_v43 }
 0x31d   : >> { %v1034_v47 = vmax.f32 %v998_v4, %v1016_v52  ;;  %v3375_v61 = vmax.f32 %v1000_v42, %v1018_v55  ;;  %v1001_v57 = vadd.f32 %v3267_v54, %v979_v59  ;;  %v1061_v28 = vrot.slane %v3359_v15, 1  ;;  %v950_v52 = vld [vmem:[%s3254_s23 + $0x50] sm:$0xff] }
 0x31e   : >> { %1122 = vrot.lane.b32.xlu1 %v1058_v21, %s2631_s9  ;;  %1190 = vrot.lane.b32.xlu0 %v1058_v21, %s2632_s17  ;;  %v1096_v35 = vrot.slane %v3362_v38, 1  ;;  %v1101_v26 = vrot.slane %v3362_v38, 2  ;;  %v1017_v21 = vmul.f32 0.2, %v999_v62  ;;  %v1062_v29 = vrot.slane %v3368_v60, 1 }
 0x31f   : >> { %v1098_v41 = vrot.slane %v1034_v47, 1  ;;  %v1103_v20 = vrot.slane %v1034_v47, 2  ;;  %v1019_v22 = vmul.f32 0.2, %v1001_v57  ;;  %v1109_v24 = vrot.slane %v3375_v61, 1 }
 0x320   : >> { %v3380_v13 = vsel %vm328_vm1, %v1095_v50, %v1096_v35  ;;  %v3383_v53 = vsel %vm349_vm0, %v1100_v51, %v1101_v26  ;;  %v3396_v25 = vmax.f32 %v999_v62, %v1017_v21  ;;  %v1114_v27 = vrot.slane %v3375_v61, 2  ;;  %v949_v51 = vld [vmem:[%s3254_s23 + $0x48] sm:$0xff]  ;;  %s3597_s23 = scalar_lea.vmem [#allocation3], %s2292_s22 }
 0x321   : >> { %v3391_v58 = vsel %vm328_vm1, %v1096_v35, %v1098_v41  ;;  %v3394_v17 = vsel %vm349_vm0, %v1101_v26, %v1103_v20  ;;  %v1010_v30 = vmul.f32 0.2, %v992_v44  ;;  %v1037_v31 = vmax.f32 %v1001_v57, %v1019_v22 }
 0x322   : >> { %1214 = vrot.lane.b32.xlu1 %v1079_v34, %s2633_s14  ;;  %1192 = vrot.lane.b32.xlu0 %v1060_v36, %s2632_s17  ;;  %v1108_v33 = vrot.slane %v3396_v25, 1  ;;  %v1113_v11 = vrot.slane %v3396_v25, 2  ;;  %v1063_v0 = vsel %vm328_vm1, %v1061_v28, %v1062_v29  ;;  %v1082_v42 = vrot.slane %v3359_v15, 2 }
 0x323   : >> { %v1028_v1 = vmax.f32 %v992_v44, %v1010_v30  ;;  %v1083_v49 = vrot.slane %v3368_v60, 2  ;;  %v971_v55 = vmul.f32 %v3263_v12, %v949_v51  ;;  %v972_v59 = vmul.f32 %v3263_v12, %v950_v52 }
 0x324   : >> { %v3407_v37 = vsel %vm328_vm1, %v1108_v33, %v1109_v24  ;;  %v3410_v39 = vsel %vm349_vm0, %v1113_v11, %v1114_v27  ;;  %v1013_v41 = vmul.f32 0.2, %v3330_v32 }
 0x325   : >> { %v1064_v23 = vrot.slane %v1028_v1, 1  ;;  %v1084_v43 = vsel %vm349_vm0, %v1082_v42, %v1083_v49  ;;  %v1085_v56 = vrot.slane %v1028_v1, 2  ;;  %v993_v44 = vadd.f32 %v3267_v54, %v971_v55 }
 0x326   : >> { %1146 = vrot.lane.b32.xlu1 %v1079_v34, %s2630_s8  ;;  %1124 = vrot.lane.b32.xlu0 %v1060_v36, %s2631_s9  ;;  %v1111_v34 = vrot.slane %v1037_v31, 1  ;;  %v1116_v36 = vrot.slane %v1037_v31, 2  ;;  %v994_v26 = vadd.f32 %v3267_v54, %v972_v59  ;;  %v1031_v21 = vmax.f32 %v3330_v32, %v1013_v41 }
 0x327   : >> { %v1065_v50 = vsel %vm328_vm1, %v1062_v29, %v1064_v23  ;;  %v1086_v35 = vsel %vm349_vm0, %v1083_v49, %v1085_v56  ;;  %v1011_v47 = vmul.f32 0.2, %v993_v44 }
 0x328   : >> { %v3414_v3 = vsel %vm328_vm1, %v1109_v24, %v1111_v34  ;;  %v3417_v4 = vsel %vm349_vm0, %v1114_v27, %v1116_v36  ;;  %v1012_v62 = vmul.f32 0.2, %v994_v26  ;;  %v1069_v27 = vrot.slane %v1031_v21, 1 }
 0x329   : >> { %v3444_v12 = vmax.f32 %v993_v44, %v1011_v47  ;;  %v1090_v32 = vrot.slane %v1031_v21, 2 }
 0x32a   : >> { %1238 = vrot.lane.b32.xlu1 %v3359_v15, %s2634_s16  ;;  %1216 = vrot.lane.b32.xlu0 %v1081_v63, %s2633_s14 }
 0x32b   : >> { %v1066_v54 = vrot.slane %v3444_v12, 1  ;;  %v1087_v22 = vrot.slane %v3444_v12, 2 }
 0x32e   : >> { %1170 = vrot.lane.b32.xlu1 %v3359_v15, %s2629_s29  ;;  %1148 = vrot.lane.b32.xlu0 %v1081_v63, %s2630_s8  ;;  %v3446_v63 = vmax.f32 %v994_v26, %v1012_v62 }
 0x330   : >> { %v1067_v57 = vrot.slane %v3446_v63, 1  ;;  %v1088_v24 = vrot.slane %v3446_v63, 2 }
 0x332   : >> { %1262 = vrot.lane.b32.xlu1 %v1063_v0, %s2635_s18  ;;  %1240 = vrot.lane.b32.xlu0 %v3368_v60, %s2634_s16  ;;  %v1068_v20 = vsel %vm328_vm1, %v1066_v54, %v1067_v57  ;;  %v1089_v28 = vsel %vm349_vm0, %v1087_v22, %v1088_v24  ;;  %v1070_v29 = vsel %vm328_vm1, %v1067_v57, %v1069_v27  ;;  %vm1790_vm1 = vcmask (%p931_p12), 519168  }
 0x333   : >> { %v1091_v30 = vsel %vm349_vm0, %v1088_v24, %v1090_v32  ;;  %vm1665_vm0 = vcmask (%p931_p12), 48128  }
 0x336   : >> { %1194 = vrot.lane.b32.xlu1 %v1063_v0, %s2632_s17  ;;  %1172 = vrot.lane.b32.xlu0 %v3368_v60, %s2629_s29 }
 0x33a   : >> { %1286 = vrot.lane.b32.xlu1 %v1084_v43, %s2636_s19  ;;  %1264 = vrot.lane.b32.xlu0 %v1065_v50, %s2635_s18 }
 0x33e   : >> { %1196 = vrot.lane.b32.xlu1 %v1065_v50, %s2632_s17  ;;  %1126 = vrot.lane.b32.xlu0 %v1063_v0, %s2631_s9 }
 0x342   : >> { %1288 = vrot.lane.b32.xlu1 %v1086_v35, %s2636_s19  ;;  %1218 = vrot.lane.b32.xlu0 %v1084_v43, %s2633_s14 }
 0x346   : >> { %1150 = vrot.lane.b32.xlu1 %v1084_v43, %s2630_s8  ;;  %1128 = vrot.lane.b32.xlu0 %v1065_v50, %s2631_s9 }
 0x34a   : >> { %1242 = vrot.lane.b32.xlu1 %v3444_v12, %s2634_s16  ;;  %1220 = vrot.lane.b32.xlu0 %v1086_v35, %s2633_s14 }
 0x34e   : >> { %1174 = vrot.lane.b32.xlu1 %v3444_v12, %s2629_s29  ;;  %1152 = vrot.lane.b32.xlu0 %v1086_v35, %s2630_s8 }
 0x352   : >> { %1266 = vrot.lane.b32.xlu1 %v1068_v20, %s2635_s18  ;;  %1244 = vrot.lane.b32.xlu0 %v3446_v63, %s2634_s16 }
 0x356   : >> { %1198 = vrot.lane.b32.xlu1 %v1068_v20, %s2632_s17  ;;  %1176 = vrot.lane.b32.xlu0 %v3446_v63, %s2629_s29 }
 0x35a   : >> { %1290 = vrot.lane.b32.xlu1 %v1089_v28, %s2636_s19  ;;  %1268 = vrot.lane.b32.xlu0 %v1070_v29, %s2635_s18 }
 0x35e   : >> { %1200 = vrot.lane.b32.xlu1 %v1070_v29, %s2632_s17  ;;  %1130 = vrot.lane.b32.xlu0 %v1068_v20, %s2631_s9 }
 0x362   : >> { %1292 = vrot.lane.b32.xlu1 %v1091_v30, %s2636_s19  ;;  %1222 = vrot.lane.b32.xlu0 %v1089_v28, %s2633_s14 }
 0x366   : >> { %1154 = vrot.lane.b32.xlu1 %v1089_v28, %s2630_s8  ;;  %1132 = vrot.lane.b32.xlu0 %v1070_v29, %s2631_s9 }
 0x36a   : >> { %1246 = vrot.lane.b32.xlu1 %v3351_v2, %s2634_s16  ;;  %1224 = vrot.lane.b32.xlu0 %v1091_v30, %s2633_s14 }
 0x36e   : >> { %1178 = vrot.lane.b32.xlu1 %v3351_v2, %s2629_s29  ;;  %1156 = vrot.lane.b32.xlu0 %v1091_v30, %s2630_s8  ;;  %s2638_s8 = smov (%p931_p12), 122  }
 0x372   : >> { %1270 = vrot.lane.b32.xlu1 %v3380_v13, %s2635_s18  ;;  %1248 = vrot.lane.b32.xlu0 %v3362_v38, %s2634_s16 }
 0x376   : >> { %1202 = vrot.lane.b32.xlu1 %v3380_v13, %s2632_s17  ;;  %1180 = vrot.lane.b32.xlu0 %v3362_v38, %s2629_s29  ;;  %s2637_s29 = smov (%p931_p12), 124  }
 0x37a   : >> { %1294 = vrot.lane.b32.xlu1 %v3383_v53, %s2636_s19  ;;  %1272 = vrot.lane.b32.xlu0 %v3391_v58, %s2635_s18 }
 0x37e   : >> { %1226 = vrot.lane.b32.xlu1 %v3383_v53, %s2633_s14  ;;  %1204 = vrot.lane.b32.xlu0 %v3391_v58, %s2632_s17 }
 0x382   : >> { %1228 = vrot.lane.b32.xlu1 %v3394_v17, %s2633_s14  ;;  %1296 = vrot.lane.b32.xlu0 %v3394_v17, %s2636_s19  ;;  %s2639_s14 = smov (%p931_p12), 64  }
 0x384   : >> { %v1169_v2 = vpop.permute.xlu1 %1168  ;;  %v1167_v38 = vpop.permute.xlu0 %1166 }
 0x386   : >> { %1252 = vrot.lane.b32.xlu1 %v3375_v61, %s2634_s16  ;;  %1250 = vrot.lane.b32.xlu0 %v3396_v25, %s2634_s16  ;;  %s2298_s16 = sshll.u32 (%p931_p12), %s2702_s28, 7  ;;  %s2640_s28 = smov (%p931_p12), [#allocation4]  }
 0x388   : >> { %v1143_v13 = vpop.permute.xlu1 %1142  ;;  %v1119_v31 = vpop.permute.xlu0 %1118 }
 0x38a   : >> { %1276 = vrot.lane.b32.xlu1 %v3414_v3, %s2635_s18  ;;  %1274 = vrot.lane.b32.xlu0 %v3407_v37, %s2635_s18  ;;  %v1310_v37 = vsel %vm588_vm3, %v3296_v48, %v1119_v31  ;;  %s2155_s18 = sshll.u32 (%p931_p12), %s2789_s15, 4  ;;  %s2156_s18 = int_to_ptr.vmem [resolvable:$true] %s2155_s18 }
 0x38c   : >> { %v1145_v53 = vpop.permute.xlu1 %1144  ;;  %v1121_v58 = vpop.permute.xlu0 %1120 }
 0x38d   : >> { %v1311_v51 = vsel %vm588_vm3, %v3298_v40, %v1121_v58 }
 0x38e   : >> { %1300 = vrot.lane.b32.xlu1 %v3417_v4, %s2636_s19  ;;  %1298 = vrot.lane.b32.xlu0 %v3410_v39, %s2636_s19  ;;  %v1319_v4 = vsel %vm597_vm4, %v1310_v37, %v1143_v13  ;;  %v1320_v44 = vsel %vm597_vm4, %v1311_v51, %v1145_v53 }
 0x38f   : >> { %v1328_v23 = vsel %vm606_vm5, %v1319_v4, %v1167_v38  ;;  %v1329_v26 = vsel %vm606_vm5, %v1320_v44, %v1169_v2 }
 0x390   : >> { %v1123_v61 = vpop.permute.xlu1 %1122  ;;  %v1191_v17 = vpop.permute.xlu0 %1190 }
 0x391   : >> { %v1337_v50 = vsel %vm615_vm6, %v1328_v23, %v1191_v17  ;;  %v1312_v13 = vsel %vm588_vm3, %v3294_v45, %v1123_v61 }
 0x394   : >> { %v1215_v33 = vpop.permute.xlu1 %1214  ;;  %v1193_v25 = vpop.permute.xlu0 %1192 }
 0x395   : >> { %v1346_v52 = vsel %vm624_vm7, %v1337_v50, %v1215_v33  ;;  %v1338_v40 = vsel %vm615_vm6, %v1329_v26, %v1193_v25 }
 0x398   : >> { %v1147_v11 = vpop.permute.xlu1 %1146  ;;  %v1125_v34 = vpop.permute.xlu0 %1124 }
 0x399   : >> { %v1321_v31 = vsel %vm597_vm4, %v1312_v13, %v1147_v11  ;;  %v1313_v45 = vsel %vm588_vm3, %v3292_v10, %v1125_v34 }
 0x39c   : >> { %v1239_v36 = vpop.permute.xlu1 %1238  ;;  %v1217_v0 = vpop.permute.xlu0 %1216 }
 0x39d   : >> { %v1355_v55 = vsel %vm633_vm8, %v1346_v52, %v1239_v36  ;;  %v1347_v54 = vsel %vm624_vm7, %v1338_v40, %v1217_v0 }
 0x3a0   : >> { %v1171_v1 = vpop.permute.xlu1 %1170  ;;  %v1149_v3 = vpop.permute.xlu0 %1148 }
 0x3a1   : >> { %v1330_v53 = vsel %vm606_vm5, %v1321_v31, %v1171_v1  ;;  %v1322_v61 = vsel %vm597_vm4, %v1313_v45, %v1149_v3 }
 0x3a4   : >> { %v1263_v42 = vpop.permute.xlu1 %1262  ;;  %v1241_v49 = vpop.permute.xlu0 %1240 }
 0x3a5   : >> { %v1364_v56 = vsel %vm642_vm9, %v1355_v55, %v1263_v42  ;;  %v1356_v57 = vsel %vm633_vm8, %v1347_v54, %v1241_v49 }
 0x3a8   : >> { %v1195_v39 = vpop.permute.xlu1 %1194  ;;  %v1173_v43 = vpop.permute.xlu0 %1172 }
 0x3a9   : >> { %v1339_v33 = vsel %vm615_vm6, %v1330_v53, %v1195_v39  ;;  %v1331_v11 = vsel %vm606_vm5, %v1322_v61, %v1173_v43 }
 0x3ac   : >> { %v1287_v48 = vpop.permute.xlu1 %1286  ;;  %v1265_v59 = vpop.permute.xlu0 %1264 }
 0x3ad   : >> { %v1373_v35 = vsel %vm651_vm10, %v1364_v56, %v1287_v48  ;;  %v1365_v41 = vsel %vm642_vm9, %v1356_v57, %v1265_v59 }
 0x3ae   : >> { %2357 = vmatprep.mubr.msk.f32.mxu0 %vm660_vm11, %v1373_v35 }
 0x3b0   : >> { %v1197_v47 = vpop.permute.xlu1 %1196  ;;  %v1127_v62 = vpop.permute.xlu0 %1126 }
 0x3b1   : >> { %v1340_v23 = vsel %vm615_vm6, %v1331_v11, %v1197_v47  ;;  %v1314_v26 = vsel %vm588_vm3, %v3359_v15, %v1127_v62 }
 0x3b4   : >> { %v1289_v20 = vpop.permute.xlu1 %1288  ;;  %v1219_v21 = vpop.permute.xlu0 %1218 }
 0x3b5   : >> { %v1374_v22 = vsel %vm651_vm10, %v1365_v41, %v1289_v20  ;;  %v1348_v25 = vsel %vm624_vm7, %v1339_v33, %v1219_v21 }
 0x3b6   : >> { %2358 = vmatmul.mubr.msk.f32.vlgmr.msra.gmra.mxu0 %vm660_vm11, %v1374_v22 }
 0x3b8   : >> { %v1151_v24 = vpop.permute.xlu1 %1150  ;;  %v1129_v27 = vpop.permute.xlu0 %1128 }
 0x3b9   : >> { %v1323_v47 = vsel %vm597_vm4, %v1314_v26, %v1151_v24  ;;  %v1315_v15 = vsel %vm588_vm3, %v3368_v60, %v1129_v27 }
 0x3bc   : >> { %v1243_v28 = vpop.permute.xlu1 %1242  ;;  %v1221_v29 = vpop.permute.xlu0 %1220 }
 0x3bd   : >> { %v1357_v36 = vsel %vm633_vm8, %v1348_v25, %v1243_v28  ;;  %v1349_v39 = vsel %vm624_vm7, %v1340_v23, %v1221_v29 }
 0x3c0   : >> { %v1175_v32 = vpop.permute.xlu1 %1174  ;;  %v1153_v30 = vpop.permute.xlu0 %1152 }
 0x3c1   : >> { %v1332_v40 = vsel %vm606_vm5, %v1323_v47, %v1175_v32  ;;  %v1324_v62 = vsel %vm597_vm4, %v1315_v15, %v1153_v30 }
 0x3c4   : >> { %v1267_v2 = vpop.permute.xlu1 %1266  ;;  %v1245_v38 = vpop.permute.xlu0 %1244 }
 0x3c5   : >> { %v1366_v0 = vsel %vm642_vm9, %v1357_v36, %v1267_v2  ;;  %v1358_v50 = vsel %vm633_vm8, %v1349_v39, %v1245_v38 }
 0x3c8   : >> { %v1199_v58 = vpop.permute.xlu1 %1198  ;;  %v1177_v17 = vpop.permute.xlu0 %1176 }
 0x3c9   : >> { %v1341_v41 = vsel %vm615_vm6, %v1332_v40, %v1199_v58  ;;  %v1333_v24 = vsel %vm606_vm5, %v1324_v62, %v1177_v17 }
 0x3cc   : >> { %v1291_v37 = vpop.permute.xlu1 %1290  ;;  %v1269_v42 = vpop.permute.xlu0 %1268 }
 0x3cd   : >> { %v1375_v49 = vsel %vm651_vm10, %v1366_v0, %v1291_v37  ;;  %v1367_v51 = vsel %vm642_vm9, %v1358_v50, %v1269_v42 }
 0x3ce   : >> { %2360 = vmatprep.mubr.msk.f32.mxu0 %vm660_vm11, %v1375_v49 }
 0x3d0   : >> { %v1201_v1 = vpop.permute.xlu1 %1200  ;;  %v1131_v4 = vpop.permute.xlu0 %1130 }
 0x3d1   : >> { %v1342_v13 = vsel %vm615_vm6, %v1333_v24, %v1201_v1  ;;  %v1316_v17 = vsel %vm588_vm3, %v3444_v12, %v1131_v4 }
 0x3d4   : >> { %v1293_v52 = vpop.permute.xlu1 %1292  ;;  %v1223_v55 = vpop.permute.xlu0 %1222 }
 0x3d5   : >> { %v1376_v10 = vsel %vm651_vm10, %v1367_v51, %v1293_v52  ;;  %v1350_v20 = vsel %vm624_vm7, %v1341_v41, %v1223_v55 }
 0x3d6   : >> { %2361 = vmatmul.mubr.msk.f32.gmra.mxu0 %vm660_vm11, %v1376_v10 }
 0x3d8   : >> { %v1155_v34 = vpop.permute.xlu1 %1154  ;;  %v1133_v3 = vpop.permute.xlu0 %1132 }
 0x3d9   : >> { %v1317_v36 = vsel %vm588_vm3, %v3446_v63, %v1133_v3  ;;  %v1325_v0 = vsel %vm597_vm4, %v1316_v17, %v1155_v34 }
 0x3dc   : >> { %v1247_v56 = vpop.permute.xlu1 %1246  ;;  %v1225_v43 = vpop.permute.xlu0 %1224 }
 0x3dd   : >> { %v1359_v21 = vsel %vm633_vm8, %v1350_v20, %v1247_v56  ;;  %v1351_v31 = vsel %vm624_vm7, %v1342_v13, %v1225_v43 }
 0x3e0   : >> { %v1179_v48 = vpop.permute.xlu1 %1178  ;;  %v1157_v59 = vpop.permute.xlu0 %1156 }
 0x3e1   : >> { %v1326_v37 = vsel %vm597_vm4, %v1317_v36, %v1157_v59  ;;  %v1334_v42 = vsel %vm606_vm5, %v1325_v0, %v1179_v48 }
 0x3e4   : >> { %v1271_v44 = vpop.permute.xlu1 %1270  ;;  %v1249_v35 = vpop.permute.xlu0 %1248 }
 0x3e5   : >> { %v1368_v22 = vsel %vm642_vm9, %v1359_v21, %v1271_v44  ;;  %v1360_v53 = vsel %vm633_vm8, %v1351_v31, %v1249_v35 }
 0x3e8   : >> { %v1203_v54 = vpop.permute.xlu1 %1202  ;;  %v1181_v57 = vpop.permute.xlu0 %1180 }
 0x3e9   : >> { %v1335_v49 = vsel %vm606_vm5, %v1326_v37, %v1181_v57  ;;  %v1343_v11 = vsel %vm615_vm6, %v1334_v42, %v1203_v54 }
 0x3ec   : >> { %v1295_v28 = vpop.permute.xlu1 %1294  ;;  %v1273_v29 = vpop.permute.xlu0 %1272 }
 0x3ed   : >> { %v1377_v2 = vsel %vm651_vm10, %v1368_v22, %v1295_v28  ;;  %v1369_v58 = vsel %vm642_vm9, %v1360_v53, %v1273_v29 }
 0x3ee   : >> { %2363 = vmatprep.mubr.msk.f32.mxu1 %vm660_vm11, %v1377_v2 }
 0x3f0   : >> { %v1227_v32 = vpop.permute.xlu1 %1226  ;;  %v1205_v38 = vpop.permute.xlu0 %1204 }
 0x3f1   : >> { %v1344_v1 = vsel %vm615_vm6, %v1335_v49, %v1205_v38  ;;  %v1352_v12 = vsel %vm624_vm7, %v1343_v11, %v1227_v32 }
 0x3f4   : >> { %v1229_v33 = vpop.permute.xlu1 %1228  ;;  %v1297_v25 = vpop.permute.xlu0 %1296 }
 0x3f5   : >> { %v1378_v60 = vsel %vm651_vm10, %v1369_v58, %v1297_v25  ;;  %v1353_v4 = vsel %vm624_vm7, %v1344_v1, %v1229_v33 }
 0x3f6   : >> { %2364 = vmatmul.mubr.msk.f32.vlgmr.msra.gmra.mxu1 %vm660_vm11, %v1378_v60 }
 0x3f8   : >> { %v1253_v27 = vpop.permute.xlu1 %1252  ;;  %v1251_v30 = vpop.permute.xlu0 %1250 }
 0x3f9   : >> { %v1362_v63 = vsel %vm633_vm8, %v1353_v4, %v1253_v27  ;;  %v1361_v23 = vsel %vm633_vm8, %v1352_v12, %v1251_v30 }
 0x3fc   : >> { %v1277_v45 = vpop.permute.xlu1 %1276  ;;  %v1275_v61 = vpop.permute.xlu0 %1274 }
 0x3fd   : >> { %v1371_v39 = vsel %vm642_vm9, %v1362_v63, %v1277_v45  ;;  %v1370_v50 = vsel %vm642_vm9, %v1361_v23, %v1275_v61 }
 0x400   : >> { %v1301_v51 = vpop.permute.xlu1 %1300  ;;  %v1299_v52 = vpop.permute.xlu0 %1298 }
 0x401   : >> { %v1380_v55 = vsel %vm651_vm10, %v1371_v39, %v1301_v51  ;;  %v1379_v10 = vsel %vm651_vm10, %v1370_v50, %v1299_v52 }
 0x402   : >> { %2366 = vmatprep.mubr.msk.f32.mxu1 %vm660_vm11, %v1379_v10 }
 0x403   : >> { %2367 = vmatmul.mubr.msk.f32.gmra.mxu1 %vm660_vm11, %v1380_v55 }
 0x476   : >> { %v2359_v34 = vpop.f32.mrf.mxu0 }
 0x477   : >> { %v1538_v3 = vmul.f32 %v2359_v34, %v2359_v34  ;;  %1570 = vst.msk [vmem:[%s3597_s23 + $0x8] sm:$0xff] %vm597_vm4, %v2359_v34  ;;  %v1516_v43 = vsel %vm597_vm4, %v2359_v34, 0.0 }
 0x478   : >> { %v1476_v56 = vpop.f32.mrf.mxu0 }
 0x479   : >> { %v1515_v48 = vsel %vm597_vm4, %v1476_v56, 0.0  ;;  %v1537_v59 = vmul.f32 %v1476_v56, %v1476_v56  ;;  %1569 = vst.msk [vmem:[%s3597_s23] sm:$0xff] %vm597_vm4, %v1476_v56  ;;  %v1546_v35 = vsel %vm597_vm4, %v1538_v3, 0.0 }
 0x47a   : >> { %v1517_v44 = vadd.f32 %v1516_v43, %v1515_v48 }
 0x47b   : >> { %v1545_v26 = vsel %vm597_vm4, %v1537_v59, 0.0 }
 0x47c   : >> { %v1547_v47 = vadd.f32 %v1546_v35, %v1545_v26 }
 0x496   : >> { %v2362_v40 = vpop.f32.mrf.mxu0 }
 0x497   : >> { %1572 = vst.msk [vmem:[%s3597_s23 + $0x18] sm:$0xff] %vm597_vm4, %v2362_v40  ;;  %v1540_v29 = vmul.f32 %v2362_v40, %v2362_v40  ;;  %v1520_v62 = vsel %vm597_vm4, %v2362_v40, 0.0 }
 0x498   : >> { %v1486_v54 = vpop.f32.mrf.mxu0 }
 0x499   : >> { %1571 = vst.msk [vmem:[%s3597_s23 + $0x10] sm:$0xff] %vm597_vm4, %v1486_v54  ;;  %v1539_v57 = vmul.f32 %v1486_v54, %v1486_v54  ;;  %v1518_v20 = vsel %vm597_vm4, %v1486_v54, 0.0  ;;  %v1550_v38 = vsel %vm597_vm4, %v1540_v29, 0.0 }
 0x49a   : >> { %v1519_v28 = vadd.f32 %v1518_v20, %v1517_v44 }
 0x49b   : >> { %v1548_v22 = vsel %vm597_vm4, %v1539_v57, 0.0 }
 0x49c   : >> { %v1549_v15 = vadd.f32 %v1548_v22, %v1547_v47  ;;  %v1521_v32 = vadd.f32 %v1520_v62, %v1519_v28 }
 0x49e   : >> { %v1551_v31 = vadd.f32 %v1550_v38, %v1549_v15 }
 0x4b6   : >> { %v2365_v41 = vpop.f32.mrf.mxu1 }
 0x4b7   : >> { %1574 = vst.msk [vmem:[%s3597_s23 + $0x28] sm:$0xff] %vm597_vm4, %v2365_v41  ;;  %v1542_v58 = vmul.f32 %v2365_v41, %v2365_v41  ;;  %v1524_v60 = vsel %vm597_vm4, %v2365_v41, 0.0 }
 0x4b8   : >> { %v1496_v21 = vpop.f32.mrf.mxu1 }
 0x4b9   : >> { %1573 = vst.msk [vmem:[%s3597_s23 + $0x20] sm:$0xff] %vm597_vm4, %v1496_v21  ;;  %v1541_v2 = vmul.f32 %v1496_v21, %v1496_v21  ;;  %v1522_v24 = vsel %vm597_vm4, %v1496_v21, 0.0  ;;  %v1554_v17 = vsel %vm597_vm4, %v1542_v58, 0.0 }
 0x4ba   : >> { %v1523_v53 = vadd.f32 %v1522_v24, %v1521_v32 }
 0x4bb   : >> { %v1552_v13 = vsel %vm597_vm4, %v1541_v2, 0.0  ;;  %v1577_v2 = vld [vmem:[%s4015_s5] sm:$0x1] (%p931_p12) }
 0x4bc   : >> { %v1553_v33 = vadd.f32 %v1552_v13, %v1551_v31  ;;  %v1525_v30 = vadd.f32 %v1524_v60, %v1523_v53 }
 0x4be   : >> { %v1555_v49 = vadd.f32 %v1554_v17, %v1553_v33 }
 0x4c3   : >> { %v2368_v25 = vpop.f32.mrf.mxu1 }
 0x4c4   : >> { %1576 = vst.msk [vmem:[%s3597_s23 + $0x38] sm:$0xff] %vm597_vm4, %v2368_v25  ;;  %v1544_v36 = vmul.f32 %v2368_v25, %v2368_v25  ;;  %v1528_v45 = vsel %vm597_vm4, %v2368_v25, 0.0 }
 0x4c5   : >> { %v1506_v27 = vpop.f32.mrf.mxu1 }
 0x4c6   : >> { %v1526_v0 = vsel %vm597_vm4, %v1506_v27, 0.0  ;;  %v1543_v37 = vmul.f32 %v1506_v27, %v1506_v27  ;;  %1575 = vst.msk [vmem:[%s3597_s23 + $0x30] sm:$0xff] %vm597_vm4, %v1506_v27  ;;  %v1558_v12 = vsel %vm597_vm4, %v1544_v36, 0.0  ;;  %s3970_s23 = scalar_lea.hbm (%p931_p12), %s4017_s7, %s2298_s16 }
 0x4c7   : >> { %v1527_v42 = vadd.f32 %v1526_v0, %v1525_v30 }
 0x4c8   : >> { %v1556_v61 = vsel %vm597_vm4, %v1543_v37, 0.0 }
 0x4c9   : >> { %v1529_v11 = vadd.f32 %v1528_v45, %v1527_v42  ;;  %v1557_v1 = vadd.f32 %v1556_v61, %v1555_v49 }
 0x4cb   : >> { %v1530_v4 = vrot.slane %v1529_v11, 4  ;;  %v1559_v63 = vadd.f32 %v1558_v12, %v1557_v1 }
 0x4cd   : >> { %v1531_v23 = vadd.f32 %v1530_v4, %v1529_v11  ;;  %v1560_v39 = vrot.slane %v1559_v63, 4 }
 0x4cf   : >> { %v1532_v50 = vrot.slane %v1531_v23, 2  ;;  %v1561_v51 = vadd.f32 %v1560_v39, %v1559_v63 }
 0x4d1   : >> { %v1533_v52 = vadd.f32 %v1532_v50, %v1531_v23  ;;  %v1562_v55 = vrot.slane %v1561_v51, 2 }
 0x4d3   : >> { %v1534_v10 = vrot.slane %v1533_v52, 1  ;;  %v1563_v34 = vadd.f32 %v1562_v55, %v1561_v51 }
 0x4d5   : >> { %v1535_v3 = vadd.f32 %v1534_v10, %v1533_v52  ;;  %v1564_v56 = vrot.slane %v1563_v34, 1 }
 0x4d7   : >> { %v1536_v43 = vadd.f32 %v2614_v14, %v1535_v3   ;;  %v1565_v48 = vadd.f32 %v1564_v56, %v1563_v34  ;;  %933 = sbr.rel (!%p931_p12) target bundleno = 770 (0x302), region = 115  ;;  %v1578_v34 = vld [vmem:[%s4016_s6] sm:$0x1] (%p931_p12) }
 0x4d9   : >> { %v1566_v59 = vadd.f32 %v2610_v19, %v1565_v48   ;;  %v4023_v14 = vmov %v1536_v43  ;;  %v1579_v44 = vsel (%p931_p12), %vm886_vm14, %v1536_v43, 0.0  ;;  %1596 = vrot.lane.b32.xlu1 (%p931_p12), %v1536_v43, %s2628_s20 }
 0x4da   : > { %1580 = vadd.xlane.f32.xlu0 (%p931_p12), %v1579_v44 }
 0x4db   : >> { %v4022_v19 = vmov %v1566_v59  ;;  %v1583_v14 = vsel (%p931_p12), %vm886_vm14, %v1566_v59, 0.0 }
 0x4dd   : > { %1619 = vrot.lane.b32.xlu1 %v1536_v43, %s2637_s29 }
 0x4de   : > { %1584 = vadd.xlane.f32.xlu0 %v1583_v14 }
 0x4e1   : > { %1641 = vrot.lane.b32.xlu1 %v1536_v43, %s2638_s8 }
 0x4e5   : > { %1648 = vrot.lane.b32.xlu1 %v1566_v59, %s2638_s8  ;;  %s2510_s8 = scalar_lea.vmem %s2156_s18, 128 }
 0x4e6   : > { %p2511_p13 = scmp.ne.s32.totalorder %s2156_s18, %s2510_s8 }
 0x4e8   : > { %p2512_p0 = pnand %p2511_p13, %p2719_p5 }
 0x4ea   : > { %p2513_p1 = pneg %p2512_p0 }
 0x4f4   : > { %1604 = vrot.lane.b32.xlu0 %v1566_v59, %s2628_s20  ;;  %s2514_s20 = sshll.u32 %s2640_s28, 4  ;;  %s2515_s20 = int_to_ptr.vmem [resolvable:$false] %s2514_s20 }
 0x4f5   : > { %s2516_s21 = scalar_lea.vmem %s2515_s20, 256  ;;  %p2517_p2 = scmp.lt.s32.totalorder %s2156_s18, %s2515_s20 }
 0x4f6   : > { %p2518_p3 = scmp.lt.s32.totalorder %s2516_s21, %s2510_s8 }
 0x4f8   : > { %1626 = vrot.lane.b32.xlu0 %v1566_v59, %s2637_s29  ;;  %p2519_p4 = por %p2518_p3, %p2517_p2 }
 0x4fa   : > { %p2520_p7 = pnand %p2519_p4, %p2513_p1 }
 0x54b   : > { %v1597_v35 = vpop.permute.xlu1 %1596 }
 0x54c   : > { %v1599_v5 = vsel %vm886_vm14, %v1597_v35, 0.0 }
 0x54d   : > { %1600 = vadd.xlane.f32.xlu1 %v1599_v5  ;;  %v1674_v5 = vld [vmem:[#allocation3 + $0x20] sm:$0xff] }
 0x54f   : > { %v1620_v6 = vpop.permute.xlu1 %1619 }
 0x550   : > { %v1622_v7 = vsel %vm886_vm14, %v1620_v6, 0.0 }
 0x551   : > { %1623 = vadd.xlane.f32.xlu1 %v1622_v7  ;;  %v1670_v7 = vld [vmem:[#allocation3] sm:$0xff] }
 0x553   : > { %v1642_v8 = vpop.permute.xlu1 %1641 }
 0x554   : > { %v1644_v29 = vsel %vm886_vm14, %v1642_v8, 0.0  ;;  %v1792_v8 = vld [vmem:[#allocation3 + $0x40] sm:$0xff] }
 0x557   : > { %v1649_v9 = vpop.permute.xlu1 %1648 }
 0x558   : > { %v1651_v46 = vsel %vm886_vm14, %v1649_v9, 0.0  ;;  %v1671_v9 = vld [vmem:[#allocation3 + $0x8] sm:$0xff] }
 0x559   : > { %1652 = vadd.xlane.f32.xlu1 %v1651_v46 }
 0x563   : > { %v1581_v18 = vpop.xlane.xlu0 %1580 }
 0x564   : > { %v1582_v19 = vmul.f32 0.001953125, %v1581_v18 }
 0x566   : > { %v1587_v47 = vmul.f32 %v1582_v19, %v1582_v19 }
 0x567   : > { %v1585_v26 = vpop.xlane.xlu0 %1584 }
 0x568   : > { %v1586_v40 = vmul.f32 0.001953125, %v1585_v26  ;;  %v1672_v26 = vld [vmem:[#allocation3 + $0x10] sm:$0xff] }
 0x56a   : > { %v1588_v54 = vsub.f32 %v1586_v40, %v1587_v47  ;;  %v1794_v47 = vld [vmem:[#allocation3 + $0x50] sm:$0xff] }
 0x56b   : > { %v1605_v57 = vpop.permute.xlu0 %1604 }
 0x56c   : > { %v1589_v41 = vmax.f32 %v1588_v54, 0.0  ;;  %v1607_v20 = vsel %vm886_vm14, %v1605_v57, 0.0  ;;  %v1673_v54 = vld [vmem:[#allocation3 + $0x18] sm:$0xff] }
 0x56d   : > { %1608 = vadd.xlane.f32.xlu0 %v1607_v20  ;;  %v1795_v57 = vld [vmem:[#allocation3 + $0x58] sm:$0xff] }
 0x56e   : > { %v1590_v21 = vadd.f32 1e-05, %v1589_v41  ;;  %v1675_v41 = vld [vmem:[#allocation3 + $0x28] sm:$0xff] }
 0x56f   : > { %v1627_v22 = vpop.permute.xlu0 %1626 }
 0x570   : > { %2502 = vrsqrt.f32 %v1590_v21  ;;  %v1629_v28 = vsel %vm886_vm14, %v1627_v22, 0.0 }
 0x571   : > { %1630 = vadd.xlane.f32.xlu0 %v1629_v28 }
 0x575   : > { %1645 = vadd.xlane.f32.xlu0 %v1644_v29 }
 0x57d   : > { %v2503_v15 = vpop.eup %2502 }
 0x57e   : > { %v1592_v62 = vmul.f32 %v2503_v15, %v1577_v2 }
 0x580   : > { %v1593_v24 = vmul.f32 %v1592_v62, %v1582_v19  ;;  %v1793_v19 = vld [vmem:[#allocation3 + $0x48] sm:$0xff] }
 0x582   : > { %v1594_v44 = vsub.f32 %v1578_v34, %v1593_v24 }
 0x5d6   : > { %v1601_v32 = vpop.xlane.xlu1 %1600 }
 0x5d7   : > { %v1602_v38 = vmul.f32 0.001953125, %v1601_v32 }
 0x5d9   : > { %v1611_v31 = vmul.f32 %v1602_v38, %v1602_v38 }
 0x5da   : > { %v1624_v13 = vpop.xlane.xlu1 %1623 }
 0x5db   : > { %v1625_v53 = vmul.f32 0.001953125, %v1624_v13 }
 0x5dd   : > { %v1633_v60 = vmul.f32 %v1625_v53, %v1625_v53 }
 0x5e2   : > { %v1653_v36 = vpop.xlane.xlu1 %1652 }
 0x5e3   : > { %v1654_v61 = vmul.f32 0.001953125, %v1653_v36 }
 0x5f6   : > { %v1609_v58 = vpop.xlane.xlu0 %1608 }
 0x5f7   : > { %v1610_v33 = vmul.f32 0.001953125, %v1609_v58 }
 0x5f9   : > { %v1612_v25 = vsub.f32 %v1610_v33, %v1611_v31  ;;  %v1796_v33 = vld [vmem:[#allocation3 + $0x60] sm:$0xff] }
 0x5fa   : > { %v1631_v27 = vpop.xlane.xlu0 %1630 }
 0x5fb   : > { %v1613_v30 = vmax.f32 %v1612_v25, 0.0  ;;  %v1632_v17 = vmul.f32 0.001953125, %v1631_v27 }
 0x5fd   : > { %v1614_v0 = vadd.f32 1e-05, %v1613_v30  ;;  %v1634_v37 = vsub.f32 %v1632_v17, %v1633_v60  ;;  %v1676_v17 = vld [vmem:[#allocation3 + $0x30] sm:$0xff] }
 0x5fe   : > { %v1646_v42 = vpop.xlane.xlu0 %1645 }
 0x5ff   : > { %2504 = vrsqrt.f32 %v1614_v0  ;;  %v1635_v49 = vmax.f32 %v1634_v37, 0.0  ;;  %v1647_v45 = vmul.f32 0.001953125, %v1646_v42  ;;  %v1797_v42 = vld [vmem:[#allocation3 + $0x68] sm:$0xff] }
 0x601   : > { %v1636_v11 = vadd.f32 1e-05, %v1635_v49  ;;  %v1655_v1 = vmul.f32 %v1647_v45, %v1647_v45  ;;  %v1677_v49 = vld [vmem:[#allocation3 + $0x38] sm:$0xff] }
 0x603   : > { %2506 = vrsqrt.f32 %v1636_v11  ;;  %v1656_v12 = vsub.f32 %v1654_v61, %v1655_v1 }
 0x605   : > { %v1657_v4 = vmax.f32 %v1656_v12, 0.0 }
 0x607   : > { %v1658_v63 = vadd.f32 1e-05, %v1657_v4 }
 0x609   : > { %2508 = vrsqrt.f32 %v1658_v63 }
 0x60c   : > { %v2505_v23 = vpop.eup %2504 }
 0x60d   : > { %v1616_v39 = vmul.f32 %v2505_v23, %v1577_v2 }
 0x60f   : > { %v1617_v52 = vmul.f32 %v1616_v39, %v1602_v38  ;;  %v1663_v56 = vsel %vm886_vm14, %v1592_v62, %v1616_v39 }
 0x610   : > { %v2507_v50 = vpop.eup %2506 }
 0x611   : > { %v1638_v51 = vmul.f32 %v2507_v50, %v1577_v2  ;;  %v1618_v3 = vsub.f32 %v1578_v34, %v1617_v52  ;;  %v1798_v50 = vld [vmem:[#allocation3 + $0x70] sm:$0xff] }
 0x613   : > { %v1639_v55 = vmul.f32 %v1638_v51, %v1625_v53  ;;  %v1664_v59 = vsel %vm588_vm3, %v1663_v56, %v1638_v51  ;;  %v1667_v46 = vsel %vm886_vm14, %v1594_v44, %v1618_v3 }
 0x615   : > { %v1640_v48 = vsub.f32 %v1578_v34, %v1639_v55  ;;  %v2023_v55 = vld [vmem:[#allocation3 + $0xc0] sm:$0xff] }
 0x616   : > { %v2509_v10 = vpop.eup %2508 }
 0x617   : > { %v1660_v43 = vmul.f32 %v2509_v10, %v1577_v2  ;;  %v1668_v40 = vsel %vm588_vm3, %v1667_v46, %v1640_v48  ;;  %v1912_v46 = vld [vmem:[#allocation3 + $0x90] sm:$0xff] }
 0x619   : > { %v1661_v14 = vmul.f32 %v1660_v43, %v1647_v45  ;;  %v1666_v35 = vsel %vm1665_vm0, %v1664_v59, %v1660_v43  ;;  %v1799_v43 = vld [vmem:[#allocation3 + $0x78] sm:$0xff] }
 0x61a   : > { %v3662_v6 = vrot.slane %v1666_v35, %v3250_v16  ;;  %v2024_v35 = vld [vmem:[#allocation3 + $0xc8] sm:$0xff] }
 0x61b   : > { %v1662_v18 = vsub.f32 %v1578_v34, %v1661_v14 }
 0x61c   : > { %v1686_v21 = vmul.f32 %v3662_v6, %v1674_v5  ;;  %v1682_v22 = vmul.f32 %v3662_v6, %v1670_v7  ;;  %v1800_v28 = vmul.f32 %v1792_v8, %v3662_v6  ;;  %v1683_v2 = vmul.f32 %v3662_v6, %v1671_v9  ;;  %v2025_v5 = vld [vmem:[#allocation3 + $0xd0] sm:$0xff]  ;;  %v2026_v9 = vld [vmem:[#allocation3 + $0xd8] sm:$0xff] }
 0x61d   : > { %v1669_v20 = vsel %vm1665_vm0, %v1668_v40, %v1662_v18  ;;  %v1801_v15 = vmul.f32 %v1793_v19, %v3662_v6  ;;  %v1684_v62 = vmul.f32 %v3662_v6, %v1672_v26  ;;  %v1802_v24 = vmul.f32 %v1794_v47, %v3662_v6  ;;  %v2027_v18 = vld [vmem:[#allocation3 + $0xe0] sm:$0xff] }
 0x61e   : > { %v3671_v29 = vrot.slane %v1669_v20, %v3250_v16  ;;  %v1685_v32 = vmul.f32 %v3662_v6, %v1673_v54  ;;  %v1803_v38 = vmul.f32 %v1795_v57, %v3662_v6  ;;  %v1687_v13 = vmul.f32 %v3662_v6, %v1675_v41 }
 0x61f   : > { %v1804_v61 = vmul.f32 %v1796_v33, %v3662_v6  ;;  %v1688_v63 = vmul.f32 %v3662_v6, %v1676_v17  ;;  %v1805_v23 = vmul.f32 %v1797_v42, %v3662_v6  ;;  %v1689_v39 = vmul.f32 %v3662_v6, %v1677_v49  ;;  %v2030_v17 = vld [vmem:[#allocation3 + $0xf8] sm:$0xff] }
 0x620   : > { %v1698_v31 = vadd.f32 %v3671_v29, %v1686_v21  ;;  %v1694_v53 = vadd.f32 %v3671_v29, %v1682_v22  ;;  %v1808_v16 = vadd.f32 %v1800_v28, %v3671_v29  ;;  %v1695_v58 = vadd.f32 %v3671_v29, %v1683_v2  ;;  %v1914_v2 = vld [vmem:[#allocation3 + $0xa0] sm:$0xff]  ;;  %v1913_v42 = vld [vmem:[#allocation3 + $0x98] sm:$0xff] }
 0x621   : > { %v1809_v25 = vadd.f32 %v1801_v15, %v3671_v29  ;;  %v1696_v60 = vadd.f32 %v3671_v29, %v1684_v62  ;;  %v3687_v27 = vadd.f32 %v1802_v24, %v3671_v29  ;;  %v3690_v30 = vadd.f32 %v3671_v29, %v1685_v32  ;;  %v2028_v32 = vld [vmem:[#allocation3 + $0xe8] sm:$0xff] }
 0x622   : > { %v1706_v36 = vmul.f32 0.2, %v1698_v31  ;;  %v1702_v0 = vmul.f32 0.2, %v1694_v53  ;;  %v3693_v37 = vadd.f32 %v1803_v38, %v3671_v29  ;;  %v3696_v45 = vadd.f32 %v3671_v29, %v1687_v13 }
 0x623   : > { %v1816_v12 = vmul.f32 0.2, %v1808_v16  ;;  %v1703_v4 = vmul.f32 0.2, %v1695_v58  ;;  %v1817_v51 = vmul.f32 0.2, %v1809_v25  ;;  %v3711_v52 = vadd.f32 %v1804_v61, %v3671_v29 }
 0x624   : > { %v3699_v11 = vmax.f32 %v1698_v31, %v1706_v36  ;;  %v3701_v1 = vmax.f32 %v1694_v53, %v1702_v0  ;;  %v1704_v10 = vmul.f32 0.2, %v1696_v60  ;;  %v3714_v34 = vadd.f32 %v3671_v29, %v1688_v63  ;;  %v1911_v0 = vld [vmem:[#allocation3 + $0x88] sm:$0xff] }
 0x625   : > { %v3717_v3 = vadd.f32 %v1805_v23, %v3671_v29  ;;  %v3720_v56 = vadd.f32 %v3671_v29, %v1689_v39  ;;  %v3722_v48 = vmax.f32 %v1808_v16, %v1816_v12  ;;  %v3724_v59 = vmax.f32 %v1695_v58, %v1703_v4  ;;  %v1915_v12 = vld [vmem:[#allocation3 + $0xa8] sm:$0xff] }
 0x626   : > { %1734 = vrot.lane.b32.xlu1 %v3699_v11, %s2637_s29  ;;  %1726 = vrot.lane.b32.xlu0 %v3701_v1, %s2637_s29  ;;  %v1806_v44 = vmul.f32 %v1798_v50, %v3662_v6  ;;  %v2031_v14 = vmul.f32 %v2023_v55, %v3662_v6  ;;  %v1807_v8 = vmul.f32 %v1799_v43, %v3662_v6  ;;  %v1818_v47 = vmul.f32 0.2, %v3687_v27  ;;  %v1917_v55 = vld [vmem:[#allocation3 + $0xb8] sm:$0xff] }
 0x627   : > { %v3736_v19 = vmax.f32 %v1809_v25, %v1817_v51  ;;  %v3738_v26 = vmax.f32 %v1696_v60, %v1704_v10  ;;  %v1705_v54 = vmul.f32 0.2, %v3690_v30  ;;  %v2032_v41 = vmul.f32 %v2024_v35, %v3662_v6  ;;  %v2029_v60 = vld [vmem:[#allocation3 + $0xf0] sm:$0xff] }
 0x628   : > { %v3733_v7 = vadd.f32 %v1806_v44, %v3671_v29  ;;  %v3742_v40 = vadd.f32 %v2031_v14, %v3671_v29  ;;  %v3746_v57 = vadd.f32 %v1807_v8, %v3671_v29  ;;  %v2033_v20 = vmul.f32 %v2025_v5, %v3662_v6  ;;  %v1916_v14 = vld [vmem:[#allocation3 + $0xb0] sm:$0xff] }
 0x629   : > { %v2034_v21 = vmul.f32 %v2026_v9, %v3662_v6  ;;  %v1920_v22 = vmul.f32 %v1912_v46, %v3662_v6  ;;  %v2035_v28 = vmul.f32 %v2027_v18, %v3662_v6  ;;  %v1819_v15 = vmul.f32 0.2, %v3693_v37 }
 0x62a   : > { %1840 = vrot.lane.b32.xlu1 %v3722_v48, %s2637_s29  ;;  %1728 = vrot.lane.b32.xlu0 %v3724_v59, %s2637_s29  ;;  %v3759_v62 = vadd.f32 %v2032_v41, %v3671_v29  ;;  %v3762_v24 = vadd.f32 %v2033_v20, %v3671_v29  ;;  %v1707_v38 = vmul.f32 0.2, %v3696_v45  ;;  %v3775_v16 = vmax.f32 %v3687_v27, %v1818_v47  ;;  %v1910_v27 = vld [vmem:[#allocation3 + $0x80] sm:$0xff] }
 0x62b   : > { %v3766_v13 = vadd.f32 %v2034_v21, %v3671_v29  ;;  %v3769_v31 = vadd.f32 %v1920_v22, %v3671_v29  ;;  %v3772_v53 = vadd.f32 %v2035_v28, %v3671_v29  ;;  %v3778_v58 = vmax.f32 %v3690_v30, %v1705_v54 }
 0x62c   : > { %v1922_v33 = vmul.f32 %v1914_v2, %v3662_v6  ;;  %v2036_v25 = vmul.f32 %v2028_v32, %v3662_v6  ;;  %v3790_v30 = vmax.f32 %v3693_v37, %v1819_v15  ;;  %v3793_v49 = vmax.f32 %v3696_v45, %v1707_v38 }
 0x62d   : > { %v1820_v4 = vmul.f32 0.2, %v3711_v52  ;;  %v1708_v63 = vmul.f32 0.2, %v3714_v34  ;;  %v2037_v23 = vmul.f32 %v2029_v60, %v3662_v6  ;;  %v2038_v39 = vmul.f32 %v2030_v17, %v3662_v6 }
 0x62e   : > { %1842 = vrot.lane.b32.xlu1 %v3736_v19, %s2637_s29  ;;  %1730 = vrot.lane.b32.xlu0 %v3738_v26, %s2637_s29  ;;  %v3787_v36 = vadd.f32 %v1922_v33, %v3671_v29  ;;  %v2044_v61 = vadd.f32 %v2036_v25, %v3671_v29  ;;  %v1918_v50 = vmul.f32 %v1910_v27, %v3662_v6  ;;  %v1821_v45 = vmul.f32 0.2, %v3717_v3 }
 0x62f   : > { %v1919_v51 = vmul.f32 %v1911_v0, %v3662_v6  ;;  %v1921_v37 = vmul.f32 %v1913_v42, %v3662_v6  ;;  %v2045_v10 = vadd.f32 %v2037_v23, %v3671_v29  ;;  %v2046_v43 = vadd.f32 %v2038_v39, %v3671_v29 }
 0x630   : > { %v1923_v44 = vmul.f32 %v1915_v12, %v3662_v6  ;;  %v1709_v35 = vmul.f32 0.2, %v3720_v56  ;;  %v1926_v5 = vadd.f32 %v1918_v50, %v3671_v29  ;;  %v3816_v46 = vmax.f32 %v3711_v52, %v1820_v4 }
 0x631   : > { %v1927_v8 = vadd.f32 %v1919_v51, %v3671_v29  ;;  %v1929_v9 = vadd.f32 %v1921_v37, %v3671_v29  ;;  %v3819_v18 = vmax.f32 %v3714_v34, %v1708_v63  ;;  %v1925_v54 = vmul.f32 %v1917_v55, %v3662_v6 }
 0x632   : > { %1844 = vrot.lane.b32.xlu1 %v3775_v16, %s2637_s29  ;;  %1732 = vrot.lane.b32.xlu0 %v3778_v58, %s2637_s29  ;;  %v1931_v47 = vadd.f32 %v1923_v44, %v3671_v29  ;;  %v1924_v41 = vmul.f32 %v1916_v14, %v3662_v6  ;;  %v3833_v34 = vmax.f32 %v3717_v3, %v1821_v45  ;;  %v1822_v22 = vmul.f32 0.2, %v3733_v7 }
 0x633   : > { %v1933_v20 = vadd.f32 %v1925_v54, %v3671_v29  ;;  %v3836_v21 = vmax.f32 %v3720_v56, %v1709_v35  ;;  %v2047_v6 = vmul.f32 0.2, %v3742_v40  ;;  %v1823_v3 = vmul.f32 0.2, %v3746_v57 }
 0x634   : > { %v3830_v52 = vadd.f32 %v1924_v41, %v3671_v29  ;;  %v3845_v28 = vmax.f32 %v3733_v7, %v1822_v22  ;;  %v2048_v56 = vmul.f32 0.2, %v3759_v62  ;;  %v2049_v7 = vmul.f32 0.2, %v3762_v24 }
 0x635   : > { %v3848_v29 = vmax.f32 %v3742_v40, %v2047_v6  ;;  %v3857_v2 = vmax.f32 %v3746_v57, %v1823_v3  ;;  %v2050_v40 = vmul.f32 0.2, %v3766_v13  ;;  %v1936_v57 = vmul.f32 0.2, %v3769_v31 }
 0x636   : > { %1846 = vrot.lane.b32.xlu1 %v3790_v30, %s2637_s29  ;;  %1736 = vrot.lane.b32.xlu0 %v3793_v49, %s2637_s29  ;;  %v3860_v15 = vmax.f32 %v3759_v62, %v2048_v56  ;;  %v3869_v32 = vmax.f32 %v3762_v24, %v2049_v7  ;;  %v2051_v62 = vmul.f32 0.2, %v3772_v53  ;;  %v1938_v24 = vmul.f32 0.2, %v3787_v36 }
 0x637   : > { %v3872_v38 = vmax.f32 %v3766_v13, %v2050_v40  ;;  %v3881_v33 = vmax.f32 %v3769_v31, %v1936_v57  ;;  %v2052_v13 = vmul.f32 0.2, %v2044_v61  ;;  %v2053_v27 = vmul.f32 0.2, %v2045_v10 }
 0x638   : > { %v3884_v25 = vmax.f32 %v3772_v53, %v2051_v62  ;;  %v3892_v60 = vmax.f32 %v3787_v36, %v1938_v24  ;;  %v2054_v53 = vmul.f32 0.2, %v2046_v43  ;;  %v1934_v42 = vmul.f32 0.2, %v1926_v5 }
 0x639   : > { %v3894_v17 = vmax.f32 %v2044_v61, %v2052_v13  ;;  %v3900_v31 = vmax.f32 %v2045_v10, %v2053_v27  ;;  %v1935_v61 = vmul.f32 0.2, %v1927_v8  ;;  %v1937_v4 = vmul.f32 0.2, %v1929_v9 }
 0x63a   : > { %1848 = vrot.lane.b32.xlu1 %v3816_v46, %s2637_s29  ;;  %1738 = vrot.lane.b32.xlu0 %v3819_v18, %s2637_s29  ;;  %v3904_v0 = vmax.f32 %v2046_v43, %v2054_v53  ;;  %v3908_v36 = vmax.f32 %v1926_v5, %v1934_v42  ;;  %v1939_v23 = vmul.f32 0.2, %v1931_v47  ;;  %v1941_v50 = vmul.f32 0.2, %v1933_v20 }
 0x63b   : > { %v3912_v12 = vmax.f32 %v1927_v8, %v1935_v61  ;;  %v3916_v63 = vmax.f32 %v1929_v9, %v1937_v4  ;;  %v1940_v4 = vmul.f32 0.2, %v3830_v52 }
 0x63c   : > { %v3920_v39 = vmax.f32 %v1931_v47, %v1939_v23  ;;  %v3924_v51 = vmax.f32 %v1933_v20, %v1941_v50 }
 0x63e   : > { %1850 = vrot.lane.b32.xlu1 %v3833_v34, %s2637_s29  ;;  %1740 = vrot.lane.b32.xlu0 %v3836_v21, %s2637_s29 }
 0x642   : > { %1852 = vrot.lane.b32.xlu1 %v3845_v28, %s2637_s29  ;;  %2071 = vrot.lane.b32.xlu0 %v3848_v29, %s2637_s29 }
 0x646   : > { %1854 = vrot.lane.b32.xlu1 %v3857_v2, %s2637_s29  ;;  %2073 = vrot.lane.b32.xlu0 %v3860_v15, %s2637_s29 }
 0x64a   : > { %2075 = vrot.lane.b32.xlu1 %v3869_v32, %s2637_s29  ;;  %2077 = vrot.lane.b32.xlu0 %v3872_v38, %s2637_s29 }
 0x64e   : > { %1962 = vrot.lane.b32.xlu1 %v3881_v33, %s2637_s29  ;;  %2079 = vrot.lane.b32.xlu0 %v3884_v25, %s2637_s29 }
 0x652   : > { %1966 = vrot.lane.b32.xlu1 %v3892_v60, %s2637_s29  ;;  %2081 = vrot.lane.b32.xlu0 %v3894_v17, %s2637_s29 }
 0x656   : > { %2083 = vrot.lane.b32.xlu0 %v3900_v31, %s2637_s29 }
 0x65a   : > { %2085 = vrot.lane.b32.xlu0 %v3904_v0, %s2637_s29 }
 0x65e   : > { %1958 = vrot.lane.b32.xlu0 %v3908_v36, %s2637_s29 }
 0x662   : > { %1960 = vrot.lane.b32.xlu0 %v3912_v12, %s2637_s29 }
 0x666   : > { %1964 = vrot.lane.b32.xlu0 %v3916_v63, %s2637_s29 }
 0x66a   : > { %1968 = vrot.lane.b32.xlu0 %v3920_v39, %s2637_s29 }
 0x66e   : > { %1972 = vrot.lane.b32.xlu0 %v3924_v51, %s2637_s29 }
 0x698   : > { %v1735_v37 = vpop.permute.xlu1 %1734  ;;  %v1727_v55 = vpop.permute.xlu0 %1726 }
 0x699   : > { %v1750_v45 = vadd.f32 %v1727_v55, %v3701_v1  ;;  %v1754_v20 = vadd.f32 %v1735_v37, %v3699_v11 }
 0x69b   : > { %1758 = vxpose.xlu0.b32.start [1/8] (short) (narrow) %v1750_v45, 8 }
 0x69c   : > { %v1841_v10 = vpop.permute.xlu1 %1840  ;;  %v1729_v43 = vpop.permute.xlu0 %1728 }
 0x69d   : > { %v1864_v44 = vadd.f32 %v1841_v10, %v3722_v48  ;;  %v1751_v14 = vadd.f32 %v1729_v43, %v3724_v59 }
 0x69f   : > { %1872 = vxpose.xlu1.b32.start [1/8] (short) (narrow) %v1864_v44, 8  ;;  %1759 = vxpose.xlu0.b32.cont [2/8] (short) (narrow) %v1751_v14, 8 }
 0x6a0   : > { %v1843_v35 = vpop.permute.xlu1 %1842  ;;  %v1731_v5 = vpop.permute.xlu0 %1730 }
 0x6a1   : > { %v1865_v8 = vadd.f32 %v1843_v35, %v3736_v19  ;;  %v1752_v9 = vadd.f32 %v1731_v5, %v3738_v26 }
 0x6a3   : > { %1873 = vxpose.xlu1.b32.cont [2/8] (short) (narrow) %v1865_v8, 8  ;;  %1760 = vxpose.xlu0.b32.cont [3/8] (short) (narrow) %v1752_v9, 8 }
 0x6a4   : > { %v1845_v47 = vpop.permute.xlu1 %1844  ;;  %v1733_v54 = vpop.permute.xlu0 %1732 }
 0x6a5   : > { %v1866_v1 = vadd.f32 %v1845_v47, %v3775_v16  ;;  %v1753_v41 = vadd.f32 %v1733_v54, %v3778_v58 }
 0x6a7   : > { %1874 = vxpose.xlu1.b32.cont [3/8] (short) (narrow) %v1866_v1, 8  ;;  %1761 = vxpose.xlu0.b32.cont [4/8] (short) (narrow) %v1753_v41, 8 }
 0x6a8   : > { %v1847_v48 = vpop.permute.xlu1 %1846  ;;  %v1737_v59 = vpop.permute.xlu0 %1736 }
 0x6a9   : > { %v1867_v22 = vadd.f32 %v1847_v48, %v3790_v30  ;;  %v1755_v6 = vadd.f32 %v1737_v59, %v3793_v49 }
 0x6ab   : > { %1875 = vxpose.xlu1.b32.cont [4/8] (short) (narrow) %v1867_v22, 8  ;;  %1762 = vxpose.xlu0.b32.cont [5/8] (short) (narrow) %v1754_v20, 8 }
 0x6ac   : > { %v1849_v19 = vpop.permute.xlu1 %1848  ;;  %v1739_v26 = vpop.permute.xlu0 %1738 }
 0x6ad   : > { %v1868_v3 = vadd.f32 %v1849_v19, %v3816_v46  ;;  %v1756_v56 = vadd.f32 %v1739_v26, %v3819_v18 }
 0x6af   : > { %1876 = vxpose.xlu1.b32.cont [5/8] (short) (narrow) %v1868_v3, 8  ;;  %1763 = vxpose.xlu0.b32.cont [6/8] (short) (narrow) %v1755_v6, 8 }
 0x6b0   : > { %v1851_v16 = vpop.permute.xlu1 %1850  ;;  %v1741_v58 = vpop.permute.xlu0 %1740 }
 0x6b1   : > { %v1869_v7 = vadd.f32 %v1851_v16, %v3833_v34  ;;  %v1757_v40 = vadd.f32 %v1741_v58, %v3836_v21 }
 0x6b3   : > { %1877 = vxpose.xlu1.b32.cont [6/8] (short) (narrow) %v1869_v7, 8  ;;  %1764 = vxpose.xlu0.b32.cont [7/8] (short) (narrow) %v1756_v56, 8 }
 0x6b4   : > { %v1853_v11 = vpop.permute.xlu1 %1852  ;;  %v2072_v30 = vpop.permute.xlu0 %2071 }
 0x6b5   : > { %v1870_v57 = vadd.f32 %v1853_v11, %v3845_v28  ;;  %v2095_v62 = vadd.f32 %v2072_v30, %v3848_v29 }
 0x6b7   : > { %1878 = vxpose.xlu1.b32.cont [7/8] (short) (narrow) %v1870_v57, 8  ;;  %1765 = vxpose.xlu0.b32.end [8/8] (short) (narrow) %v1757_v40, 8 }
 0x6b8   : > { %v1855_v49 = vpop.permute.xlu1 %1854  ;;  %v2074_v46 = vpop.permute.xlu0 %2073 }
 0x6b9   : > { %v1871_v24 = vadd.f32 %v1855_v49, %v3857_v2  ;;  %v2096_v34 = vadd.f32 %v2074_v46, %v3860_v15 }
 0x6bb   : > { %1879 = vxpose.xlu1.b32.end [8/8] (short) (narrow) %v1871_v24, 8  ;;  %2103 = vxpose.xlu0.b32.start [1/8] (short) (narrow) %v2095_v62, 8 }
 0x6bc   : > { %v2078_v18 = vpop.permute.xlu0 %2077  ;;  %v2076_v13 = vpop.permute.xlu1 %2075 }
 0x6bd   : > { %v2097_v21 = vadd.f32 %v2076_v13, %v3869_v32  ;;  %v2098_v28 = vadd.f32 %v2078_v18, %v3872_v38  ;;  %v1948_v38 = vmax.f32 %v3830_v52, %v1940_v4 }
 0x6bf   : > { %2104 = vxpose.xlu0.b32.cont [2/8] (short) (narrow) %v2096_v34, 8 }
 0x6c0   : > { %v2080_v27 = vpop.permute.xlu0 %2079  ;;  %v1963_v37 = vpop.permute.xlu1 %1962 }
 0x6c1   : > { %v2099_v42 = vadd.f32 %v2080_v27, %v3884_v25  ;;  %v1984_v55 = vadd.f32 %v1963_v37, %v3881_v33 }
 0x6c3   : > { %2105 = vxpose.xlu0.b32.cont [3/8] (short) (narrow) %v2097_v21, 8 }
 0x6c4   : > { %v2082_v53 = vpop.permute.xlu0 %2081  ;;  %v1967_v45 = vpop.permute.xlu1 %1966 }
 0x6c5   : > { %v2100_v2 = vadd.f32 %v2082_v53, %v3894_v17  ;;  %v1986_v10 = vadd.f32 %v1967_v45, %v3892_v60 }
 0x6c7   : > { %2106 = vxpose.xlu0.b32.cont [4/8] (short) (narrow) %v2098_v28, 8 }
 0x6c8   : > { %v2084_v29 = vpop.permute.xlu0 %2083 }
 0x6c9   : > { %v2101_v61 = vadd.f32 %v2084_v29, %v3900_v31 }
 0x6cb   : > { %2107 = vxpose.xlu0.b32.cont [5/8] (short) (narrow) %v2099_v42, 8 }
 0x6cc   : > { %v2086_v15 = vpop.permute.xlu0 %2085 }
 0x6cd   : > { %v2102_v32 = vadd.f32 %v2086_v15, %v3904_v0 }
 0x6cf   : > { %2108 = vxpose.xlu0.b32.cont [6/8] (short) (narrow) %v2100_v2, 8 }
 0x6d0   : > { %v1959_v23 = vpop.permute.xlu0 %1958 }
 0x6d1   : > { %v1982_v25 = vadd.f32 %v1959_v23, %v3908_v36 }
 0x6d3   : > { %2109 = vxpose.xlu0.b32.cont [7/8] (short) (narrow) %v2101_v61, 8 }
 0x6d4   : > { %v1961_v50 = vpop.permute.xlu0 %1960 }
 0x6d5   : > { %v1983_v17 = vadd.f32 %v1961_v50, %v3912_v12 }
 0x6d7   : > { %2110 = vxpose.xlu0.b32.end [8/8] (short) (narrow) %v2102_v32, 8 }
 0x6d8   : > { %v1965_v31 = vpop.permute.xlu0 %1964 }
 0x6d9   : > { %1970 = vrot.lane.b32.xlu1 %v1948_v38, %s2637_s29  ;;  %v1985_v0 = vadd.f32 %v1965_v31, %v3916_v63  ;;  %s2141_s29 = scalar_lea.sflag [#allocation5], %s269_s13 }
 0x6dc   : > { %v1969_v52 = vpop.permute.xlu0 %1968 }
 0x6dd   : > { %v1987_v43 = vadd.f32 %v1969_v52, %v3920_v39 }
 0x6e0   : > { %v1973_v36 = vpop.permute.xlu0 %1972 }
 0x6e1   : > { %v1989_v39 = vadd.f32 %v1973_v36, %v3924_v51 }
 0x702   : > { %1990 = vxpose.xlu1.b32.start [1/8] (short) (narrow) %v1982_v25, 8 }
 0x706   : > { %1991 = vxpose.xlu1.b32.cont [2/8] (short) (narrow) %v1983_v17, 8 }
 0x70a   : > { %1992 = vxpose.xlu1.b32.cont [3/8] (short) (narrow) %v1984_v55, 8 }
 0x70e   : > { %1993 = vxpose.xlu1.b32.cont [4/8] (short) (narrow) %v1985_v0, 8 }
 0x712   : > { %1994 = vxpose.xlu1.b32.cont [5/8] (short) (narrow) %v1986_v10, 8 }
 0x716   : > { %1995 = vxpose.xlu1.b32.cont [6/8] (short) (narrow) %v1987_v43, 8 }
 0x717   : > { %v1774_v12 = vpop.trf.xlu0 }
 0x718   : > { %1791 = vst.msk [vmem:[%s2789_s15] sm:$0xf] %vm1790_vm1, %v1774_v12 }
 0x71b   : > { %v1888_v33 = vpop.trf.xlu1 }
 0x71c   : > { %1905 = vrot.lane.b32.xlu0 %v1888_v33, %s2639_s14 }
 0x737   : > { %v2119_v63 = vpop.trf.xlu0 }
 0x738   : > { %2136 = vrot.lane.b32.xlu0 %v2119_v63, %s2639_s14 }
 0x74b   : > { %v1971_v60 = vpop.permute.xlu1 %1970 }
 0x74c   : > { %v1988_v44 = vadd.f32 %v1971_v60, %v1948_v38 }
 0x74e   : > { %1996 = vxpose.xlu1.b32.cont [7/8] (short) (narrow) %v1988_v44, 8 }
 0x752   : > { %1997 = vxpose.xlu1.b32.end [8/8] (short) (narrow) %v1989_v39, 8 }
 0x78e   : > { %v1906_v14 = vpop.permute.xlu0 %1905 }
 0x78f   : > { %1909 = vst.msk [vmem:[%s2789_s15] sm:$0xf] %vm1908_vm2, %v1906_v14 }
 0x7aa   : > { %v2137_v35 = vpop.permute.xlu0 %2136 }
 0x7b2   : > { %v2006_v5 = vpop.trf.xlu1 }
 0x7b3   : > { %2022 = vst.msk [vmem:[%s2789_s15 + $0x4] sm:$0xf] %vm1790_vm1, %v2006_v5 }
 0x7b4   : > { %2139 = vst.msk [vmem:[%s2789_s15 + $0x4] sm:$0xf] %vm1908_vm2, %v2137_v35 }
 0x7b5   : > { %2523 = shalt.err (!%p2520_p7)
}
 0x7b6   : > { %s2524_s15 = scalar_lea.hbm %s3970_s23, 128  ;;  %s2528_s17 = scalar_lea.hbm %s4017_s7, 256 }
 0x7b7   : > { %p2525_p8 = scmp.ne.s32.totalorder %s3970_s23, %s2524_s15  ;;  %p2529_p11 = scmp.lt.s32.totalorder %s3970_s23, %s4017_s7 }
 0x7b8   : > { %p2530_p12 = scmp.lt.s32.totalorder %s2528_s17, %s2524_s15 }
 0x7b9   : > { %p2526_p9 = pnand %p2525_p8, %p2719_p5 }
 0x7ba   : > { %p2531_p13 = por %p2530_p12, %p2529_p11 }
 0x7bb   : > { %p2527_p10 = pneg %p2526_p9 }
 0x7bd   : > { %p2532_p0 = pnand %p2531_p13, %p2527_p10 }
 0x7bf   : > { %2535 = shalt.err (!%p2532_p0)
}
 0x7c0   : > { %2390 = dma.vmem_to_hbm [thread:$0]  (%p2719_p5), %s2156_s18, 128, %s3970_s23, %s2141_s29  }
 0x7c1 PF: > { %p2396_p1 = scmp.ge.s32.totalorder %s2594_s27, 2  ;;  %s2167_s19 = sand.u32 1, %s2582_s24  }
 0x7c2   : > { %s2168_s22 = scalar_lea.sflag [#allocation5], %s2167_s19 }
 0x7c3   : > { %p2393_p2 = pnand %p2396_p1, %p2723_p6 }
 0x7c5   : > { %p2394_p3 = pneg %p2393_p2 }
 0x7c7   : > { %2577 = dma.done.wait (%p2394_p3), %s2168_s22, 128  }
 0x7c8   : > { %2579 = vsyncadd (%p2394_p3), %s2168_s22, 4294967168  ;;  %p17_p4 = scmp.ge.s32.totalorder %s2706_s30, 4   ;;  %s4024_s24 = smov %s2586_s25 }
 0x7c9   : > { %s4025_s25 = smov %s2590_s26  ;;  %s4026_s26 = smov %s2717_s10 }
 0x7ca   : > { %s4027_s27 = smov %s2706_s30  ;;  %19 = sbr.rel (!%p17_p4) target bundleno = 3 (0x3), region = 126 }
 0x7cf   :  { %2173 = vsyncpa [#allocation5], 1 }
 0x7d0   :  { %2175 = vsyncpa [#allocation5 + $0x1], 1 }

</bundles_post_ra>
